<compile_context>
chip_gen: v6e
topology: v6e:2x2x1
jax: 0.10.0
libtpu: 0.0.40
codegen_flags: <defaults>
</compile_context>

<pallas_src>
import jax
import jax.numpy as jnp
from jax.experimental import pallas as pl
from jax.experimental.pallas import tpu as pltpu

# Hyperparameters implied by ReMixerImageClassificator(1, 28, 7, 10, 256, 6)
CHANNELS = 1
IMAGE_SIZE = 28
PATCH_SIZE = 7
NUM_CLASSES = 10
DIM = 256
NUM_LAYERS = 6
NUM_PATCHES = (IMAGE_SIZE // PATCH_SIZE) ** 2      # 16 tokens
PATCH_DIM = CHANNELS * PATCH_SIZE * PATCH_SIZE     # 49
LN_EPS = 1e-5

LAYERS_PER_STEP = 2                                # amortize ~0.35us/step grid cost
NUM_STEPS = NUM_LAYERS // LAYERS_PER_STEP
assert NUM_LAYERS % LAYERS_PER_STEP == 0


# ---------------------------------------------------------------------------
# In-kernel math helpers
# ---------------------------------------------------------------------------
def _erf(x):
    # Abramowitz & Stegun 7.1.26 rational approximation (max abs err ~1.5e-7),
    # so the exact-erf GELU (torch F.gelu default) lowers cleanly in Mosaic.
    a1, a2, a3, a4, a5 = 0.254829592, -0.284496736, 1.421413741, -1.453152027, 1.061405429
    p = 0.3275911
    ax = jnp.abs(x)
    t = 1.0 / (1.0 + p * ax)
    poly = ((((a5 * t + a4) * t + a3) * t + a2) * t + a1) * t
    y = 1.0 - poly * jnp.exp(-ax * ax)
    return jnp.where(x >= 0, y, -y)


def _gelu_exact(x):
    return 0.5 * x * (1.0 + _erf(x * 0.7071067811865476))


# ---------------------------------------------------------------------------
# Fused kernel: patch-embed (s==0) -> 6 RemixerBlocks (2/step) -> LN/pool/head
# Token state lives in a (B*N, D) VMEM scratch for the whole kernel.
# Rows are ordered (b*N + n) so kron(I_B, softmax(mixer)) implements token mixing.
# ---------------------------------------------------------------------------
def remixer_fused_kernel(alpha_ref, p_ref, we_ref, be_ref, w_all_ref, mix_ref,
                         ln_g_ref, ln_b_ref, wh_ref, bh_ref,
                         o_ref, state):
    s = pl.program_id(0)
    BN, D = state.shape
    B = BN // NUM_PATCHES

    # ---- patch embedding (first grid step only) -----------------------------
    @pl.when(s == 0)
    def _():
        state[...] = jnp.dot(p_ref[...], we_ref[...],
                             preferred_element_type=jnp.float32) + be_ref[...]

    # ---- LAYERS_PER_STEP RemixerBlocks (statically unrolled) ----------------
    for j in range(LAYERS_PER_STEP):
        l = s * LAYERS_PER_STEP + j                      # global layer index (traced)

        x_bf = state[...].astype(jnp.bfloat16)           # bf16 activations -> MXU fast path

        # proj_in: Linear(D, 2D, bias=False); bf16 weights straight into MXU
        w_in = w_all_ref[j, :, : 2 * D]                  # (D, 2D) bf16
        z = jnp.dot(x_bf, w_in, preferred_element_type=jnp.float32)   # (BN, 2D) f32
        h = _gelu_exact(z[:, :D])                        # (BN, D)
        gate = z[:, D:]                                  # (BN, D)

        # token mixing: one lane-dense matmul with block-diag kron(I_B, softmax(mixer))
        mixed = jnp.dot(mix_ref[l], h, preferred_element_type=jnp.float32)   # (BN, D)

        # alpha blend: (h*mixed)*a + (h-mixed)*(1-a)  ==  a*(h*mixed - t) + t,  t = h - mixed
        a = alpha_ref[l]                                 # sigmoid(alpha), SMEM scalar
        t = h - mixed
        out = (a * (h * mixed - t) + t) * gate

        # proj_out: Linear(D, D, bias=False); bf16 weights straight into MXU
        w_out = w_all_ref[j, :, 2 * D:]                  # (D, D) bf16
        state[...] = jnp.dot(out.astype(jnp.bfloat16), w_out,
                             preferred_element_type=jnp.float32)

    # ---- LayerNorm -> mean-pool -> classifier head (last grid step only) ----
    @pl.when(s == pl.num_programs(0) - 1)
    def _():
        xfin = state[...]                                # (BN, D)
        mu = jnp.mean(xfin, axis=-1, keepdims=True)
        var = jnp.mean(jnp.square(xfin - mu), axis=-1, keepdims=True)
        xn = (xfin - mu) * jax.lax.rsqrt(var + LN_EPS)
        xn = xn * ln_g_ref[...] + ln_b_ref[...]
        pooled = jnp.mean(xn.reshape(B, NUM_PATCHES, D), axis=1)     # (B, D)
        o_ref[...] = jnp.dot(pooled, wh_ref[...],
                             preferred_element_type=jnp.float32) + bh_ref[...]


# ---------------------------------------------------------------------------
# pallas_call wrapper
# ---------------------------------------------------------------------------
def remixer_forward_pallas(patches, alpha_sig, w_embed, b_embed, w_proj,
                           mix_big, ln_g, ln_b, w_head, b_head):
    BN, P = patches.shape
    B = BN // NUM_PATCHES
    L, D, D3 = w_proj.shape
    C = w_head.shape[1]

    return pl.pallas_call(
        remixer_fused_kernel,
        out_shape=jax.ShapeDtypeStruct((B, C), jnp.float32),
        grid_spec=pltpu.PrefetchScalarGridSpec(
            num_scalar_prefetch=0,
            grid=(NUM_STEPS,),
            in_specs=[
                pl.BlockSpec(memory_space=pltpu.MemorySpace.SMEM),            # sigmoid(alpha) per layer
                pl.BlockSpec((BN, P), lambda s: (0, 0)),                      # patches (resident)
                pl.BlockSpec((P, D), lambda s: (0, 0)),                       # embed weight
                pl.BlockSpec((1, D), lambda s: (0, 0)),                       # embed bias
                pl.BlockSpec((LAYERS_PER_STEP, D, D3), lambda s: (s, 0, 0)),  # [w_in|w_out] bf16, streamed per step
                pl.BlockSpec((L, BN, BN), lambda s: (0, 0, 0)),               # kron(I_B, softmax(mixer)), resident
                pl.BlockSpec((1, D), lambda s: (0, 0)),                       # LayerNorm gamma
                pl.BlockSpec((1, D), lambda s: (0, 0)),                       # LayerNorm beta
                pl.BlockSpec((D, C), lambda s: (0, 0)),                       # head weight
                pl.BlockSpec((1, C), lambda s: (0, 0)),                       # head bias
            ],
            out_specs=pl.BlockSpec((B, C), lambda s: (0, 0)),                 # logits (written on last step)
            scratch_shapes=[pltpu.VMEM((BN, D), jnp.float32)],                # carried token state
        ),
        compiler_params=pltpu.CompilerParams(
            dimension_semantics=("arbitrary",),            # layer steps are sequential (carried state)
            vmem_limit_bytes=16 * 1024 * 1024,             # safe on v5e/v6e/v7x
        ),
    )(alpha_sig, patches, w_embed, b_embed, w_proj, mix_big,
      ln_g, ln_b, w_head, b_head)


# ---------------------------------------------------------------------------
# Parameters + forward
# ---------------------------------------------------------------------------
def init_params(key):
    ks = jax.random.split(key, 8)

    def uniform(k, shape, fan_in):
        bound = 1.0 / (fan_in ** 0.5)
        return jax.random.uniform(k, shape, jnp.float32, -bound, bound)

    # proj_in (D,2D) and proj_out (D,D) stored concatenated along the last axis
    # as one bf16 array -> one streamed DMA per grid step.
    w_in = uniform(ks[2], (NUM_LAYERS, DIM, 2 * DIM), DIM)
    w_out = uniform(ks[3], (NUM_LAYERS, DIM, DIM), DIM)
    w_proj = jnp.concatenate([w_in, w_out], axis=-1).astype(jnp.bfloat16)

    return dict(
        w_embed=uniform(ks[0], (PATCH_DIM, DIM), PATCH_DIM),
        b_embed=uniform(ks[1], (1, DIM), PATCH_DIM),
        w_proj=w_proj,                                                   # (L, D, 3D) bf16
        mixers=jax.random.normal(ks[4], (NUM_LAYERS, NUM_PATCHES, NUM_PATCHES), jnp.float32),
        alphas=jnp.zeros((NUM_LAYERS,), jnp.float32),    # RemixerBlock init: alpha = 0
        ln_g=jnp.ones((1, DIM), jnp.float32),
        ln_b=jnp.zeros((1, DIM), jnp.float32),
        w_head=uniform(ks[5], (DIM, NUM_CLASSES), DIM),
        b_head=uniform(ks[6], (1, NUM_CLASSES), DIM),
    )


@jax.jit
def forward(x, params):
    B = x.shape[0]
    # glue: patchify NCHW input, 'b c (h p1) (w p2) -> b (h w) (p1 p2 c)'
    xp = x.reshape(B, CHANNELS, IMAGE_SIZE // PATCH_SIZE, PATCH_SIZE,
                   IMAGE_SIZE // PATCH_SIZE, PATCH_SIZE)
    xp = jnp.transpose(xp, (0, 2, 4, 3, 5, 1))
    patches = xp.reshape(B * NUM_PATCHES, PATCH_DIM).astype(jnp.float32)

    # cheap parameter prep host-side (keeps the hot kernel to the matmuls)
    alpha_sig = jax.nn.sigmoid(params["alphas"])
    mix_sm = jax.nn.softmax(params["mixers"], axis=-1)                    # (L, N, N)
    # block-diagonal kron(I_B, mix): token mixing becomes one (B*N,B*N)@(B*N,D) matmul
    eye_b = jnp.eye(B, dtype=jnp.float32)
    mix_big = jnp.einsum('ab,lmn->lambn', eye_b, mix_sm).reshape(
        NUM_LAYERS, B * NUM_PATCHES, B * NUM_PATCHES)

    return remixer_forward_pallas(
        patches, alpha_sig, params["w_embed"], params["b_embed"],
        params["w_proj"], mix_big,
        params["ln_g"], params["ln_b"], params["w_head"], params["b_head"])


if __name__ == "__main__":
    key = jax.random.PRNGKey(0)
    pkey, xkey = jax.random.split(key)
    params = init_params(pkey)
    x = jax.random.normal(xkey, (2, CHANNELS, IMAGE_SIZE, IMAGE_SIZE), jnp.float32)

    logits = forward(x, params)
    jax.block_until_ready(logits)
    assert logits.shape == (2, NUM_CLASSES) and logits.dtype == jnp.float32
    assert bool(jnp.all(jnp.isfinite(logits)))
    print("KERNEL_OK")
</pallas_src>

<mosaic_0001>
module attributes {stable_mosaic.version = 11 : i64} {
  func.func @remixer_fused_kernel(%arg0: i32, %arg1: memref<6xf32, #tpu.memory_space<smem>>, %arg2: memref<32x49xf32, #tpu.memory_space<vmem>>, %arg3: memref<49x256xf32, #tpu.memory_space<vmem>>, %arg4: memref<1x256xf32, #tpu.memory_space<vmem>>, %arg5: memref<2x256x768xbf16, #tpu.memory_space<vmem>>, %arg6: memref<6x32x32xf32, #tpu.memory_space<vmem>>, %arg7: memref<1x256xf32, #tpu.memory_space<vmem>>, %arg8: memref<1x256xf32, #tpu.memory_space<vmem>>, %arg9: memref<256x10xf32, #tpu.memory_space<vmem>>, %arg10: memref<1x10xf32, #tpu.memory_space<vmem>>, %arg11: memref<2x10xf32, #tpu.memory_space<vmem>>, %arg12: memref<32x256xf32, #tpu.memory_space<vmem>>) attributes {dimension_semantics = [#tpu.dimension_semantics<arbitrary>], iteration_bounds = array<i64: 3>, scalar_prefetch = 0 : i64, scratch_operands = 1 : i64, tpu.core_type = #tpu.core_type<tc>, window_params = [{transform_indices = @transform_0, window_bounds = array<i64: 6>}, {pipeline_mode = #tpu.pipeline_mode<synchronous>, transform_indices = @transform_1, window_bounds = array<i64: 32, 49>}, {pipeline_mode = #tpu.pipeline_mode<synchronous>, transform_indices = @transform_2, window_bounds = array<i64: 49, 256>}, {pipeline_mode = #tpu.pipeline_mode<synchronous>, transform_indices = @transform_3, window_bounds = array<i64: 1, 256>}, {transform_indices = @transform_4, window_bounds = array<i64: 2, 256, 768>}, {pipeline_mode = #tpu.pipeline_mode<synchronous>, transform_indices = @transform_5, window_bounds = array<i64: 6, 32, 32>}, {pipeline_mode = #tpu.pipeline_mode<synchronous>, transform_indices = @transform_6, window_bounds = array<i64: 1, 256>}, {pipeline_mode = #tpu.pipeline_mode<synchronous>, transform_indices = @transform_7, window_bounds = array<i64: 1, 256>}, {pipeline_mode = #tpu.pipeline_mode<synchronous>, transform_indices = @transform_8, window_bounds = array<i64: 256, 10>}, {pipeline_mode = #tpu.pipeline_mode<synchronous>, transform_indices = @transform_9, window_bounds = array<i64: 1, 10>}, {pipeline_mode = #tpu.pipeline_mode<synchronous>, transform_indices = @transform_10, window_bounds = array<i64: 2, 10>}]} {
    %c0_i32 = arith.constant 0 : i32
    %0 = arith.cmpi eq, %arg0, %c0_i32 : i32
    %1 = arith.extui %0 : i1 to i32
    %c0_i32_0 = arith.constant 0 : i32
    %2 = arith.cmpi ne, %1, %c0_i32_0 : i32
    scf.if %2 {
      %c0_61 = arith.constant 0 : index
      %c0_62 = arith.constant 0 : index
      %140 = vector.load %arg2[%c0_61, %c0_62] : memref<32x49xf32, #tpu.memory_space<vmem>>, vector<32x49xf32>
      %c0_63 = arith.constant 0 : index
      %c0_64 = arith.constant 0 : index
      %141 = vector.load %arg3[%c0_63, %c0_64] : memref<49x256xf32, #tpu.memory_space<vmem>>, vector<49x256xf32>
      %cst_65 = arith.constant dense<0.000000e+00> : vector<32x256xf32>
      %142 = tpu.matmul %140, %141, %cst_65 {dimension_numbers = #tpu.dot_dimension_numbers<[1], [0], [0], [1], [0, 0, 1, 1], [], []>} : vector<32x49xf32>, vector<49x256xf32>, vector<32x256xf32> -> vector<32x256xf32>
      %c0_66 = arith.constant 0 : index
      %c0_67 = arith.constant 0 : index
      %143 = vector.load %arg4[%c0_66, %c0_67] : memref<1x256xf32, #tpu.memory_space<vmem>>, vector<1x256xf32>
      %144 = vector.broadcast %143 : vector<1x256xf32> to vector<32x256xf32>
      %145 = arith.addf %142, %144 : vector<32x256xf32>
      %c0_68 = arith.constant 0 : index
      %c0_69 = arith.constant 0 : index
      %146 = vector.load %arg12[%c0_68, %c0_69] : memref<32x256xf32, #tpu.memory_space<vmem>>, vector<32x256xf32>
      tpu.vector_store %arg12[%c0_68, %c0_69], %145 {strides = array<i32>} : memref<32x256xf32, #tpu.memory_space<vmem>>, vector<32x256xf32>,
    } else {
    }
    %c2_i32 = arith.constant 2 : i32
    %3 = arith.muli %arg0, %c2_i32 : i32
    %c0_i32_1 = arith.constant 0 : i32
    %4 = arith.addi %3, %c0_i32_1 : i32
    %c0 = arith.constant 0 : index
    %c0_2 = arith.constant 0 : index
    %5 = vector.load %arg12[%c0, %c0_2] : memref<32x256xf32, #tpu.memory_space<vmem>>, vector<32x256xf32>
    %6 = arith.truncf %5 : vector<32x256xf32> to vector<32x256xbf16>
    %c0_3 = arith.constant 0 : index
    %c0_4 = arith.constant 0 : index
    %c0_5 = arith.constant 0 : index
    %7 = vector.load %arg5[%c0_3, %c0_4, %c0_5] : memref<2x256x768xbf16, #tpu.memory_space<vmem>>, vector<1x256x512xbf16>
    %8 = vector.shape_cast %7 : vector<1x256x512xbf16> to vector<256x512xbf16>
    %cst = arith.constant dense<0.000000e+00> : vector<32x512xf32>
    %9 = tpu.matmul %6, %8, %cst {dimension_numbers = #tpu.dot_dimension_numbers<[1], [0], [0], [1], [0, 0, 1, 1], [], []>} : vector<32x256xbf16>, vector<256x512xbf16>, vector<32x512xf32> -> vector<32x512xf32>
    %10 = vector.extract_strided_slice %9 {offsets = [0, 0], sizes = [32, 256], strides = [1, 1]} : vector<32x512xf32> to vector<32x256xf32>
    %cst_6 = arith.constant 5.000000e-01 : f32
    %11 = vector.broadcast %cst_6 : f32 to vector<32x256xf32>
    %12 = arith.mulf %11, %10 : vector<32x256xf32>
    %cst_7 = arith.constant 0.707106769 : f32
    %13 = vector.broadcast %cst_7 : f32 to vector<32x256xf32>
    %14 = arith.mulf %10, %13 : vector<32x256xf32>
    %15 = math.absf %14 : vector<32x256xf32>
    %cst_8 = arith.constant 0.327591091 : f32
    %16 = vector.broadcast %cst_8 : f32 to vector<32x256xf32>
    %17 = arith.mulf %16, %15 : vector<32x256xf32>
    %cst_9 = arith.constant 1.000000e+00 : f32
    %18 = vector.broadcast %cst_9 : f32 to vector<32x256xf32>
    %19 = arith.addf %18, %17 : vector<32x256xf32>
    %cst_10 = arith.constant 1.000000e+00 : f32
    %20 = vector.broadcast %cst_10 : f32 to vector<32x256xf32>
    %21 = arith.divf %20, %19 : vector<32x256xf32>
    %cst_11 = arith.constant 1.06140542 : f32
    %22 = vector.broadcast %cst_11 : f32 to vector<32x256xf32>
    %23 = arith.mulf %22, %21 : vector<32x256xf32>
    %cst_12 = arith.constant -1.45315206 : f32
    %24 = vector.broadcast %cst_12 : f32 to vector<32x256xf32>
    %25 = arith.addf %23, %24 : vector<32x256xf32>
    %26 = arith.mulf %25, %21 : vector<32x256xf32>
    %cst_13 = arith.constant 1.42141378 : f32
    %27 = vector.broadcast %cst_13 : f32 to vector<32x256xf32>
    %28 = arith.addf %26, %27 : vector<32x256xf32>
    %29 = arith.mulf %28, %21 : vector<32x256xf32>
    %cst_14 = arith.constant -0.284496725 : f32
    %30 = vector.broadcast %cst_14 : f32 to vector<32x256xf32>
    %31 = arith.addf %29, %30 : vector<32x256xf32>
    %32 = arith.mulf %31, %21 : vector<32x256xf32>
    %cst_15 = arith.constant 0.254829586 : f32
    %33 = vector.broadcast %cst_15 : f32 to vector<32x256xf32>
    %34 = arith.addf %32, %33 : vector<32x256xf32>
    %35 = arith.mulf %34, %21 : vector<32x256xf32>
    %cst_16 = arith.constant 0.000000e+00 : f32
    %36 = vector.broadcast %cst_16 : f32 to vector<32x256xf32>
    %37 = arith.subf %36, %15 : vector<32x256xf32>
    %38 = arith.mulf %37, %15 : vector<32x256xf32>
    %39 = math.exp %38 : vector<32x256xf32>
    %40 = arith.mulf %35, %39 : vector<32x256xf32>
    %cst_17 = arith.constant 1.000000e+00 : f32
    %41 = vector.broadcast %cst_17 : f32 to vector<32x256xf32>
    %42 = arith.subf %41, %40 : vector<32x256xf32>
    %cst_18 = arith.constant 0.000000e+00 : f32
    %43 = vector.broadcast %cst_18 : f32 to vector<32x256xf32>
    %44 = arith.cmpf oge, %14, %43 : vector<32x256xf32>
    %cst_19 = arith.constant 0.000000e+00 : f32
    %45 = vector.broadcast %cst_19 : f32 to vector<32x256xf32>
    %46 = arith.subf %45, %42 : vector<32x256xf32>
    %47 = arith.select %44, %42, %46 : vector<32x256xi1>, vector<32x256xf32>
    %cst_20 = arith.constant 1.000000e+00 : f32
    %48 = vector.broadcast %cst_20 : f32 to vector<32x256xf32>
    %49 = arith.addf %48, %47 : vector<32x256xf32>
    %50 = arith.mulf %12, %49 : vector<32x256xf32>
    %51 = vector.extract_strided_slice %9 {offsets = [0, 256], sizes = [32, 256], strides = [1, 1]} : vector<32x512xf32> to vector<32x256xf32>
    %52 = arith.index_cast %4 : i32 to index
    %c0_21 = arith.constant 0 : index
    %c0_22 = arith.constant 0 : index
    %53 = vector.load %arg6[%52, %c0_21, %c0_22] : memref<6x32x32xf32, #tpu.memory_space<vmem>>, vector<1x32x32xf32>
    %54 = vector.shape_cast %53 : vector<1x32x32xf32> to vector<32x32xf32>
    %cst_23 = arith.constant dense<0.000000e+00> : vector<32x256xf32>
    %55 = tpu.matmul %54, %50, %cst_23 {dimension_numbers = #tpu.dot_dimension_numbers<[1], [0], [0], [1], [0, 0, 1, 1], [], []>} : vector<32x32xf32>, vector<32x256xf32>, vector<32x256xf32> -> vector<32x256xf32>
    %56 = arith.index_cast %4 : i32 to index
    %57 = memref.load %arg1[%56] : memref<6xf32, #tpu.memory_space<smem>>
    %58 = arith.subf %50, %55 : vector<32x256xf32>
    %59 = arith.mulf %50, %55 : vector<32x256xf32>
    %60 = arith.subf %59, %58 : vector<32x256xf32>
    %61 = vector.broadcast %57 : f32 to vector<32x256xf32>
    %62 = arith.mulf %61, %60 : vector<32x256xf32>
    %63 = arith.addf %62, %58 : vector<32x256xf32>
    %64 = arith.mulf %63, %51 : vector<32x256xf32>
    %c0_24 = arith.constant 0 : index
    %c0_25 = arith.constant 0 : index
    %c512 = arith.constant 512 : index
    %65 = vector.load %arg5[%c0_24, %c0_25, %c512] : memref<2x256x768xbf16, #tpu.memory_space<vmem>>, vector<1x256x256xbf16>
    %66 = vector.shape_cast %65 : vector<1x256x256xbf16> to vector<256x256xbf16>
    %67 = arith.truncf %64 : vector<32x256xf32> to vector<32x256xbf16>
    %cst_26 = arith.constant dense<0.000000e+00> : vector<32x256xf32>
    %68 = tpu.matmul %67, %66, %cst_26 {dimension_numbers = #tpu.dot_dimension_numbers<[1], [0], [0], [1], [0, 0, 1, 1], [], []>} : vector<32x256xbf16>, vector<256x256xbf16>, vector<32x256xf32> -> vector<32x256xf32>
    %c0_27 = arith.constant 0 : index
    %c0_28 = arith.constant 0 : index
    %69 = vector.load %arg12[%c0_27, %c0_28] : memref<32x256xf32, #tpu.memory_space<vmem>>, vector<32x256xf32>
    tpu.vector_store %arg12[%c0_27, %c0_28], %68 {strides = array<i32>} : memref<32x256xf32, #tpu.memory_space<vmem>>, vector<32x256xf32>,
    %c2_i32_29 = arith.constant 2 : i32
    %70 = arith.muli %arg0, %c2_i32_29 : i32
    %c1_i32 = arith.constant 1 : i32
    %71 = arith.addi %70, %c1_i32 : i32
    %c0_30 = arith.constant 0 : index
    %c0_31 = arith.constant 0 : index
    %72 = vector.load %arg12[%c0_30, %c0_31] : memref<32x256xf32, #tpu.memory_space<vmem>>, vector<32x256xf32>
    %73 = arith.truncf %72 : vector<32x256xf32> to vector<32x256xbf16>
    %c1 = arith.constant 1 : index
    %c0_32 = arith.constant 0 : index
    %c0_33 = arith.constant 0 : index
    %74 = vector.load %arg5[%c1, %c0_32, %c0_33] : memref<2x256x768xbf16, #tpu.memory_space<vmem>>, vector<1x256x512xbf16>
    %75 = vector.shape_cast %74 : vector<1x256x512xbf16> to vector<256x512xbf16>
    %cst_34 = arith.constant dense<0.000000e+00> : vector<32x512xf32>
    %76 = tpu.matmul %73, %75, %cst_34 {dimension_numbers = #tpu.dot_dimension_numbers<[1], [0], [0], [1], [0, 0, 1, 1], [], []>} : vector<32x256xbf16>, vector<256x512xbf16>, vector<32x512xf32> -> vector<32x512xf32>
    %77 = vector.extract_strided_slice %76 {offsets = [0, 0], sizes = [32, 256], strides = [1, 1]} : vector<32x512xf32> to vector<32x256xf32>
    %cst_35 = arith.constant 5.000000e-01 : f32
    %78 = vector.broadcast %cst_35 : f32 to vector<32x256xf32>
    %79 = arith.mulf %78, %77 : vector<32x256xf32>
    %cst_36 = arith.constant 0.707106769 : f32
    %80 = vector.broadcast %cst_36 : f32 to vector<32x256xf32>
    %81 = arith.mulf %77, %80 : vector<32x256xf32>
    %82 = math.absf %81 : vector<32x256xf32>
    %cst_37 = arith.constant 0.327591091 : f32
    %83 = vector.broadcast %cst_37 : f32 to vector<32x256xf32>
    %84 = arith.mulf %83, %82 : vector<32x256xf32>
    %cst_38 = arith.constant 1.000000e+00 : f32
    %85 = vector.broadcast %cst_38 : f32 to vector<32x256xf32>
    %86 = arith.addf %85, %84 : vector<32x256xf32>
    %cst_39 = arith.constant 1.000000e+00 : f32
    %87 = vector.broadcast %cst_39 : f32 to vector<32x256xf32>
    %88 = arith.divf %87, %86 : vector<32x256xf32>
    %cst_40 = arith.constant 1.06140542 : f32
    %89 = vector.broadcast %cst_40 : f32 to vector<32x256xf32>
    %90 = arith.mulf %89, %88 : vector<32x256xf32>
    %cst_41 = arith.constant -1.45315206 : f32
    %91 = vector.broadcast %cst_41 : f32 to vector<32x256xf32>
    %92 = arith.addf %90, %91 : vector<32x256xf32>
    %93 = arith.mulf %92, %88 : vector<32x256xf32>
    %cst_42 = arith.constant 1.42141378 : f32
    %94 = vector.broadcast %cst_42 : f32 to vector<32x256xf32>
    %95 = arith.addf %93, %94 : vector<32x256xf32>
    %96 = arith.mulf %95, %88 : vector<32x256xf32>
    %cst_43 = arith.constant -0.284496725 : f32
    %97 = vector.broadcast %cst_43 : f32 to vector<32x256xf32>
    %98 = arith.addf %96, %97 : vector<32x256xf32>
    %99 = arith.mulf %98, %88 : vector<32x256xf32>
    %cst_44 = arith.constant 0.254829586 : f32
    %100 = vector.broadcast %cst_44 : f32 to vector<32x256xf32>
    %101 = arith.addf %99, %100 : vector<32x256xf32>
    %102 = arith.mulf %101, %88 : vector<32x256xf32>
    %cst_45 = arith.constant 0.000000e+00 : f32
    %103 = vector.broadcast %cst_45 : f32 to vector<32x256xf32>
    %104 = arith.subf %103, %82 : vector<32x256xf32>
    %105 = arith.mulf %104, %82 : vector<32x256xf32>
    %106 = math.exp %105 : vector<32x256xf32>
    %107 = arith.mulf %102, %106 : vector<32x256xf32>
    %cst_46 = arith.constant 1.000000e+00 : f32
    %108 = vector.broadcast %cst_46 : f32 to vector<32x256xf32>
    %109 = arith.subf %108, %107 : vector<32x256xf32>
    %cst_47 = arith.constant 0.000000e+00 : f32
    %110 = vector.broadcast %cst_47 : f32 to vector<32x256xf32>
    %111 = arith.cmpf oge, %81, %110 : vector<32x256xf32>
    %cst_48 = arith.constant 0.000000e+00 : f32
    %112 = vector.broadcast %cst_48 : f32 to vector<32x256xf32>
    %113 = arith.subf %112, %109 : vector<32x256xf32>
    %114 = arith.select %111, %109, %113 : vector<32x256xi1>, vector<32x256xf32>
    %cst_49 = arith.constant 1.000000e+00 : f32
    %115 = vector.broadcast %cst_49 : f32 to vector<32x256xf32>
    %116 = arith.addf %115, %114 : vector<32x256xf32>
    %117 = arith.mulf %79, %116 : vector<32x256xf32>
    %118 = vector.extract_strided_slice %76 {offsets = [0, 256], sizes = [32, 256], strides = [1, 1]} : vector<32x512xf32> to vector<32x256xf32>
    %119 = arith.index_cast %71 : i32 to index
    %c0_50 = arith.constant 0 : index
    %c0_51 = arith.constant 0 : index
    %120 = vector.load %arg6[%119, %c0_50, %c0_51] : memref<6x32x32xf32, #tpu.memory_space<vmem>>, vector<1x32x32xf32>
    %121 = vector.shape_cast %120 : vector<1x32x32xf32> to vector<32x32xf32>
    %cst_52 = arith.constant dense<0.000000e+00> : vector<32x256xf32>
    %122 = tpu.matmul %121, %117, %cst_52 {dimension_numbers = #tpu.dot_dimension_numbers<[1], [0], [0], [1], [0, 0, 1, 1], [], []>} : vector<32x32xf32>, vector<32x256xf32>, vector<32x256xf32> -> vector<32x256xf32>
    %123 = arith.index_cast %71 : i32 to index
    %124 = memref.load %arg1[%123] : memref<6xf32, #tpu.memory_space<smem>>
    %125 = arith.subf %117, %122 : vector<32x256xf32>
    %126 = arith.mulf %117, %122 : vector<32x256xf32>
    %127 = arith.subf %126, %125 : vector<32x256xf32>
    %128 = vector.broadcast %124 : f32 to vector<32x256xf32>
    %129 = arith.mulf %128, %127 : vector<32x256xf32>
    %130 = arith.addf %129, %125 : vector<32x256xf32>
    %131 = arith.mulf %130, %118 : vector<32x256xf32>
    %c1_53 = arith.constant 1 : index
    %c0_54 = arith.constant 0 : index
    %c512_55 = arith.constant 512 : index
    %132 = vector.load %arg5[%c1_53, %c0_54, %c512_55] : memref<2x256x768xbf16, #tpu.memory_space<vmem>>, vector<1x256x256xbf16>
    %133 = vector.shape_cast %132 : vector<1x256x256xbf16> to vector<256x256xbf16>
    %134 = arith.truncf %131 : vector<32x256xf32> to vector<32x256xbf16>
    %cst_56 = arith.constant dense<0.000000e+00> : vector<32x256xf32>
    %135 = tpu.matmul %134, %133, %cst_56 {dimension_numbers = #tpu.dot_dimension_numbers<[1], [0], [0], [1], [0, 0, 1, 1], [], []>} : vector<32x256xbf16>, vector<256x256xbf16>, vector<32x256xf32> -> vector<32x256xf32>
    %c0_57 = arith.constant 0 : index
    %c0_58 = arith.constant 0 : index
    %136 = vector.load %arg12[%c0_57, %c0_58] : memref<32x256xf32, #tpu.memory_space<vmem>>, vector<32x256xf32>
    tpu.vector_store %arg12[%c0_57, %c0_58], %135 {strides = array<i32>} : memref<32x256xf32, #tpu.memory_space<vmem>>, vector<32x256xf32>,
    %c2_i32_59 = arith.constant 2 : i32
    %137 = arith.cmpi eq, %arg0, %c2_i32_59 : i32
    %138 = arith.extui %137 : i1 to i32
    %c0_i32_60 = arith.constant 0 : i32
    %139 = arith.cmpi ne, %138, %c0_i32_60 : i32
    scf.if %139 {
      %c0_61 = arith.constant 0 : index
      %c0_62 = arith.constant 0 : index
      %140 = vector.load %arg12[%c0_61, %c0_62] : memref<32x256xf32, #tpu.memory_space<vmem>>, vector<32x256xf32>
      %cst_63 = arith.constant dense<0.000000e+00> : vector<32xf32>
      %141 = vector.multi_reduction <add>, %140, %cst_63 [1] : vector<32x256xf32> to vector<32xf32>
      %142 = vector.shape_cast %141 : vector<32xf32> to vector<32x1xf32>
      %cst_64 = arith.constant 2.560000e+02 : f32
      %143 = vector.broadcast %cst_64 : f32 to vector<32x1xf32>
      %144 = arith.divf %142, %143 : vector<32x1xf32>
      %145 = vector.broadcast %144 : vector<32x1xf32> to vector<32x256xf32>
      %146 = arith.subf %140, %145 : vector<32x256xf32>
      %147 = arith.mulf %146, %146 : vector<32x256xf32>
      %cst_65 = arith.constant dense<0.000000e+00> : vector<32xf32>
      %148 = vector.multi_reduction <add>, %147, %cst_65 [1] : vector<32x256xf32> to vector<32xf32>
      %149 = vector.shape_cast %148 : vector<32xf32> to vector<32x1xf32>
      %cst_66 = arith.constant 2.560000e+02 : f32
      %150 = vector.broadcast %cst_66 : f32 to vector<32x1xf32>
      %151 = arith.divf %149, %150 : vector<32x1xf32>
      %152 = vector.broadcast %144 : vector<32x1xf32> to vector<32x256xf32>
      %153 = arith.subf %140, %152 : vector<32x256xf32>
      %cst_67 = arith.constant 9.99999974E-6 : f32
      %154 = vector.broadcast %cst_67 : f32 to vector<32x1xf32>
      %155 = arith.addf %151, %154 : vector<32x1xf32>
      %156 = math.rsqrt %155 : vector<32x1xf32>
      %157 = vector.broadcast %156 : vector<32x1xf32> to vector<32x256xf32>
      %158 = arith.mulf %153, %157 : vector<32x256xf32>
      %c0_68 = arith.constant 0 : index
      %c0_69 = arith.constant 0 : index
      %159 = vector.load %arg7[%c0_68, %c0_69] : memref<1x256xf32, #tpu.memory_space<vmem>>, vector<1x256xf32>
      %160 = vector.broadcast %159 : vector<1x256xf32> to vector<32x256xf32>
      %161 = arith.mulf %158, %160 : vector<32x256xf32>
      %c0_70 = arith.constant 0 : index
      %c0_71 = arith.constant 0 : index
      %162 = vector.load %arg8[%c0_70, %c0_71] : memref<1x256xf32, #tpu.memory_space<vmem>>, vector<1x256xf32>
      %163 = vector.broadcast %162 : vector<1x256xf32> to vector<32x256xf32>
      %164 = arith.addf %161, %163 : vector<32x256xf32>
      %165 = vector.shape_cast %164 : vector<32x256xf32> to vector<2x16x256xf32>
      %cst_72 = arith.constant dense<0.000000e+00> : vector<2x256xf32>
      %166 = vector.multi_reduction <add>, %165, %cst_72 [1] : vector<2x16x256xf32> to vector<2x256xf32>
      %cst_73 = arith.constant 1.600000e+01 : f32
      %167 = vector.broadcast %cst_73 : f32 to vector<2x256xf32>
      %168 = arith.divf %166, %167 : vector<2x256xf32>
      %c0_74 = arith.constant 0 : index
      %c0_75 = arith.constant 0 : index
      %169 = vector.load %arg9[%c0_74, %c0_75] : memref<256x10xf32, #tpu.memory_space<vmem>>, vector<256x10xf32>
      %cst_76 = arith.constant dense<0.000000e+00> : vector<2x10xf32>
      %170 = tpu.matmul %168, %169, %cst_76 {dimension_numbers = #tpu.dot_dimension_numbers<[1], [0], [0], [1], [0, 0, 1, 1], [], []>} : vector<2x256xf32>, vector<256x10xf32>, vector<2x10xf32> -> vector<2x10xf32>
      %c0_77 = arith.constant 0 : index
      %c0_78 = arith.constant 0 : index
      %171 = vector.load %arg10[%c0_77, %c0_78] : memref<1x10xf32, #tpu.memory_space<vmem>>, vector<1x10xf32>
      %172 = vector.broadcast %171 : vector<1x10xf32> to vector<2x10xf32>
      %173 = arith.addf %170, %172 : vector<2x10xf32>
      %c0_79 = arith.constant 0 : index
      %c0_80 = arith.constant 0 : index
      %174 = vector.load %arg11[%c0_79, %c0_80] : memref<2x10xf32, #tpu.memory_space<vmem>>, vector<2x10xf32>
      tpu.vector_store %arg11[%c0_79, %c0_80], %173 {strides = array<i32>} : memref<2x10xf32, #tpu.memory_space<vmem>>, vector<2x10xf32>,
    } else {
    }
    return
  }
  func.func @transform_0(%arg0: i32) -> i32 {
    %c0_i32 = arith.constant 0 : i32
    %c0_i32_0 = arith.constant 0 : i32
    return %c0_i32 : i32
  }
  func.func @transform_1(%arg0: i32) -> (i32, i32) {
    %c0_i32 = arith.constant 0 : i32
    %c0_i32_0 = arith.constant 0 : i32
    %c0_i32_1 = arith.constant 0 : i32
    return %c0_i32, %c0_i32_0 : i32, i32
  }
  func.func @transform_2(%arg0: i32) -> (i32, i32) {
    %c0_i32 = arith.constant 0 : i32
    %c0_i32_0 = arith.constant 0 : i32
    %c0_i32_1 = arith.constant 0 : i32
    return %c0_i32, %c0_i32_0 : i32, i32
  }
  func.func @transform_3(%arg0: i32) -> (i32, i32) {
    %c0_i32 = arith.constant 0 : i32
    %c0_i32_0 = arith.constant 0 : i32
    %c0_i32_1 = arith.constant 0 : i32
    return %c0_i32, %c0_i32_0 : i32, i32
  }
  func.func @transform_4(%arg0: i32) -> (i32, i32, i32) {
    %c0_i32 = arith.constant 0 : i32
    %c0_i32_0 = arith.constant 0 : i32
    %c0_i32_1 = arith.constant 0 : i32
    return %arg0, %c0_i32, %c0_i32_0 : i32, i32, i32
  }
  func.func @transform_5(%arg0: i32) -> (i32, i32, i32) {
    %c0_i32 = arith.constant 0 : i32
    %c0_i32_0 = arith.constant 0 : i32
    %c0_i32_1 = arith.constant 0 : i32
    %c0_i32_2 = arith.constant 0 : i32
    return %c0_i32, %c0_i32_0, %c0_i32_1 : i32, i32, i32
  }
  func.func @transform_6(%arg0: i32) -> (i32, i32) {
    %c0_i32 = arith.constant 0 : i32
    %c0_i32_0 = arith.constant 0 : i32
    %c0_i32_1 = arith.constant 0 : i32
    return %c0_i32, %c0_i32_0 : i32, i32
  }
  func.func @transform_7(%arg0: i32) -> (i32, i32) {
    %c0_i32 = arith.constant 0 : i32
    %c0_i32_0 = arith.constant 0 : i32
    %c0_i32_1 = arith.constant 0 : i32
    return %c0_i32, %c0_i32_0 : i32, i32
  }
  func.func @transform_8(%arg0: i32) -> (i32, i32) {
    %c0_i32 = arith.constant 0 : i32
    %c0_i32_0 = arith.constant 0 : i32
    %c0_i32_1 = arith.constant 0 : i32
    return %c0_i32, %c0_i32_0 : i32, i32
  }
  func.func @transform_9(%arg0: i32) -> (i32, i32) {
    %c0_i32 = arith.constant 0 : i32
    %c0_i32_0 = arith.constant 0 : i32
    %c0_i32_1 = arith.constant 0 : i32
    return %c0_i32, %c0_i32_0 : i32, i32
  }
  func.func @transform_10(%arg0: i32) -> (i32, i32) {
    %c0_i32 = arith.constant 0 : i32
    %c0_i32_0 = arith.constant 0 : i32
    %c0_i32_1 = arith.constant 0 : i32
    return %c0_i32, %c0_i32_0 : i32, i32
  }
}

</mosaic_0001>

<bundles_post_ra>
// kernel: forward.1
= control target key start
LH: loop header
LB: loop body
LE: loop exit
PB: predicated region body
PF: predicated region fallthrough
CT: control target
= control target key end

     0   :  { %15 = vsyncpa [#allocation6], 0  ;;  %s5397_s0 = inlined_call_operand.vmem [shape: f32[6], index: 0, kind: input, shape index: {}]   ;;  %s5398_s1 = inlined_call_operand.vmem [shape: f32[32,49], index: 1, kind: input, shape index: {}]   ;;  %s5399_s2 = inlined_call_operand.hbm [shape: f32[49,256], index: 2, kind: input, shape index: {}]   ;;  %s5400_s3 = inlined_call_operand.hbm [shape: f32[1,256], index: 3, kind: input, shape index: {}]   ;;  %s5401_s4 = inlined_call_operand.hbm [shape: bf16[6,256,768], index: 4, kind: input, shape index: {}]   ;;  %s5402_s5 = inlined_call_operand.vmem [shape: f32[6,32,32], index: 5, kind: input, shape index: {}]   ;;  %s5403_s6 = inlined_call_operand.hbm [shape: f32[1,256], index: 6, kind: input, shape index: {}]   ;;  %s5404_s7 = inlined_call_operand.hbm [shape: f32[1,256], index: 7, kind: input, shape index: {}]   ;;  %s5405_s8 = inlined_call_operand.vmem [shape: f32[256,10], index: 8, kind: input, shape index: {}]   ;;  %s5406_s9 = inlined_call_operand.hbm [shape: f32[1,10], index: 9, kind: input, shape index: {}]   ;;  %s5407_s10 = inlined_call_operand.hbm [shape: f32[2,10], index: 10, kind: output, shape index: {}]  }
   0x1   :  { %16 = vsyncpa [#allocation4], 0 }
   0x2   :  { %17 = vsyncpa [#allocation9], 0 }
   0x3   :  { %18 = vsyncpa [#allocation13], 0 }
   0x4   :  { %19 = vsyncpa [#allocation5], 0  ;;  %s4444_s13 = smov 0   ;;  %s4446_s14 = smov 0  }
   0x5   :  { %s4448_s15 = smov 0   ;;  %s4450_s16 = smov 0  }
   0x6 LB: > { %s4375_s17 = smov [#allocation7]   ;;  %s4465_s19 = sadd.s32 4294967295, %s4373_s16   ;;  %s4373_s16 = sphi %s4450_s16, %s5433_s16   ;;  %s4369_s15 = sphi %s4448_s15, %s5432_s15   ;;  %s4365_s14 = sphi %s4446_s14, %s5431_s14   ;;  %s4361_s13 = sphi %s4444_s13, %s5430_s13  }
   0x7   : > { %s292_s18 = sshll.u32 %s4375_s17, 4  ;;  %p3256_p0 = scmp.ge.s32.totalorder %s4373_s16, 1  ;;  %s293_s18 = int_to_ptr.vmem [resolvable:$true] %s292_s18 }
   0x8   : > { %p5408_p1 = scmp.eq.s32.totalorder %s4465_s19, 0  ;;  %p266_p2 = scmp.lt.s32.totalorder %s4373_s16, 4 }
   0x9   : > { %s4376_s21 = smov [#allocation8]   ;;  %s4377_s24 = smov [#allocation12]  }
   0xa   : > { %p4471_p4 = pnand %p3256_p0, %p266_p2  ;;  %s306_s22 = sshll.u32 %s4376_s21, 4  ;;  %s307_s22 = int_to_ptr.vmem [resolvable:$true] %s306_s22 }
   0xb   : > { %s331_s25 = sshll.u32 %s4377_s24, 4  ;;  %s279_s28 = sshll.u32 %s5397_s0, 4  ;;  %s4486_s25 = int_to_ptr.vmem [resolvable:$true] %s331_s25  ;;  %s280_s28 = int_to_ptr.vmem [resolvable:$true] %s279_s28 }
   0xc   : > { %s5411_s20 = scalar_select %p4471_p4, 1, 0 }
   0xd   : > { %p3675_p5 = pneg %p4471_p4  ;;  %s4129_s30 = scalar_lea.vmem %s293_s18, 1792 }
   0xe   : > { %p4130_p8 = scmp.ne.s32.totalorder %s293_s18, %s4129_s30  ;;  %p4137_p11 = scmp.lt.s32.totalorder %s293_s18, %s293_s18 }
   0xf   : > { %p4479_p6 = pnand %p3675_p5, %p5408_p1  ;;  %p4138_p12 = scmp.lt.s32.totalorder %s4129_s30, %s4129_s30 }
  0x11   : > { %p4490_p7 = pneg %p4479_p6  ;;  %p4139_p13 = por %p4138_p12, %p4137_p11 }
  0x13   : > { %p4132_p9 = pnand %p4130_p8, %p4490_p7 }
  0x15   : > { %p4133_p10 = pneg %p4132_p9 }
  0x17   : > { %p4140_p0 = pnand %p4139_p13, %p4133_p10 }
  0x19   : > { %4143 = shalt.err (!%p4140_p0)
}
  0x1a   : > { %s4378_s11 = smov 256   ;;  %s4379_s12 = smov 16  }
  0x1b   : > { %3681 = dma.hbm_to_vmem [thread:$0]  (!%p4479_p6), %s5399_s2, 1792, %s293_s18, [#allocation4], %s4378_s11, %s4378_s11, %s4379_s12  }
  0x1c   : > { %s4155_s24 = scalar_lea.vmem %s307_s22, 32  ;;  %p4163_p9 = scmp.lt.s32.totalorder %s307_s22, %s307_s22 }
  0x1d   : > { %p4156_p2 = scmp.ne.s32.totalorder %s307_s22, %s4155_s24  ;;  %p4164_p3 = scmp.lt.s32.totalorder %s4155_s24, %s4155_s24 }
  0x1f   : > { %p4158_p5 = pnand %p4156_p2, %p4490_p7  ;;  %p4165_p1 = por %p4164_p3, %p4163_p9 }
  0x21   : > { %p4159_p8 = pneg %p4158_p5 }
  0x23   : > { %p4166_p11 = pnand %p4165_p1, %p4159_p8 }
  0x25   : > { %4169 = shalt.err (!%p4166_p11)
}
  0x26   : > { %3684 = dma.hbm_to_vmem [thread:$0]  (!%p4479_p6), %s5400_s3, 32, %s307_s22, [#allocation9]  }
  0x27   : > { %s4181_s18 = scalar_lea.vmem %s4486_s25, 32  ;;  %p4189_p0 = scmp.lt.s32.totalorder %s4486_s25, %s4486_s25 }
  0x28   : > { %p4182_p10 = scmp.ne.s32.totalorder %s4486_s25, %s4181_s18  ;;  %p4190_p3 = scmp.lt.s32.totalorder %s4181_s18, %s4181_s18 }
  0x2a   : > { %p4184_p12 = pnand %p4182_p10, %p4490_p7  ;;  %p4191_p1 = por %p4190_p3, %p4189_p0 }
  0x2c   : > { %p4185_p13 = pneg %p4184_p12 }
  0x2e   : > { %p4192_p2 = pnand %p4191_p1, %p4185_p13 }
  0x30   : > { %4195 = shalt.err (!%p4192_p2)
}
  0x31   : > { %3690 = dma.hbm_to_vmem [thread:$0]  (!%p4479_p6), %s5404_s7, 32, %s4486_s25, [#allocation13]  }
  0x32   : > { %s4196_s17 = scalar_lea.vmem %s280_s28, 16  ;;  %p4204_p11 = scmp.lt.s32.totalorder %s280_s28, %s280_s28 }
  0x33   : > { %p4197_p5 = scmp.ne.s32.totalorder %s280_s28, %s4196_s17  ;;  %p4205_p10 = scmp.lt.s32.totalorder %s4196_s17, %s4196_s17 }
  0x35   : > { %p4199_p8 = pnand %p4197_p5, %p4490_p7  ;;  %p4206_p12 = por %p4205_p10, %p4204_p11 }
  0x37   : > { %p4200_p9 = pneg %p4199_p8 }
  0x39   : > { %p4207_p13 = pnand %p4206_p12, %p4200_p9 }
  0x3b   : > { %4210 = shalt.err (!%p4207_p13)
}
  0x3c   : > { %s4380_s21 = smov [#allocation3]   ;;  %s4381_s25 = smov [#allocation11]  }
  0x3d   : > { %3678 = dma.vmem_to_smem (!%p4479_p6), %s280_s28, 16, %s4380_s21, [#allocation6]  }
  0x3e   : > { %s320_s24 = sshll.u32 %s4381_s25, 4  ;;  %s4382_s26 = smov [#allocation14]   ;;  %s321_s24 = int_to_ptr.vmem [resolvable:$true] %s320_s24 }
  0x3f   : > { %s345_s27 = sshll.u32 %s4382_s26, 4  ;;  %s4222_s18 = scalar_lea.vmem %s321_s24, 32  ;;  %s346_s27 = int_to_ptr.vmem [resolvable:$true] %s345_s27 }
  0x40   : > { %p4223_p0 = scmp.ne.s32.totalorder %s321_s24, %s4222_s18  ;;  %p4230_p2 = scmp.lt.s32.totalorder %s321_s24, %s321_s24 }
  0x41   : > { %p4231_p5 = scmp.lt.s32.totalorder %s4222_s18, %s4222_s18 }
  0x42   : > { %p4225_p3 = pnand %p4223_p0, %p4490_p7 }
  0x43   : > { %p4232_p8 = por %p4231_p5, %p4230_p2 }
  0x44   : > { %p4226_p1 = pneg %p4225_p3 }
  0x46   : > { %p4233_p9 = pnand %p4232_p8, %p4226_p1 }
  0x48   : > { %4236 = shalt.err (!%p4233_p9)
}
  0x49   : > { %3687 = dma.hbm_to_vmem [thread:$0]  (!%p4479_p6), %s5403_s6, 32, %s321_s24, [#allocation9]  }
  0x4a   : > { %s4248_s11 = scalar_lea.vmem %s346_s27, 16  ;;  %s4255_s22 = scalar_lea.vmem %s346_s27, 32 }
  0x4b   : > { %p4249_p11 = scmp.ne.s32.totalorder %s346_s27, %s4248_s11  ;;  %p4256_p13 = scmp.lt.s32.totalorder %s346_s27, %s346_s27 }
  0x4c   : > { %p4257_p0 = scmp.lt.s32.totalorder %s4255_s22, %s4248_s11 }
  0x4d   : > { %p4251_p10 = pnand %p4249_p11, %p4490_p7 }
  0x4e   : > { %p4258_p3 = por %p4257_p0, %p4256_p13 }
  0x4f   : > { %p4252_p12 = pneg %p4251_p10 }
  0x51   : > { %p4259_p4 = pnand %p4258_p3, %p4252_p12 }
  0x53   : > { %4262 = shalt.err (!%p4259_p4)
}
  0x54   : > { %3693 = dma.hbm_to_vmem [thread:$0]  (!%p4479_p6), %s5406_s9, 16, %s346_s27, [#allocation13]  }
  0x55   : > { %s4543_s29 = sadd.s32 1, %s4373_s16   ;;  %s116_s23 = sadd.s32 1, %s4369_s15 }
  0x56   : > { %s113_s21 = ssub.s32 %s4373_s16, %s4543_s29  ;;  %p123_p4 = scmp.ne.s32.totalorder %s4369_s15, %s4365_s14 }
  0x57   : > { %p114_p7 = scmp.eq.s32.totalorder %s113_s21, 0  ;;  %p124_p1 = scmp.eq.s32.totalorder %s4373_s16, 0 }
  0x58   : > { %p129_p2 = scmp.ne.s32.totalorder %s4365_s14, %s4361_s13  ;;  %p3704_p5 = scmp.lt.s32.totalorder %s4373_s16, 3 }
  0x59   : > { %s4555_s25 = scalar_select %p114_p7, %s4369_s15, %s116_s23  }
  0x5a   : > { %p125_p8 = por %p124_p1, %p123_p4  ;;  %p5414_p9 = scmp.eq.s32.totalorder %s4465_s19, 0 }
  0x5b   : > { %s356_s26 = sand.u32 1, %s4373_s16   ;;  %s358_s27 = sand.u32 1, %s4369_s15  }
  0x5c   : > { %p4559_p11 = por %p5414_p9, %p129_p2  ;;  %s3642_s18 = smul.u32 1536, %s358_s27 }
  0x5d   : > { %s3643_s30 = smul.u32 24576, %s4373_s16  ;;  %p4566_p6 = pnand %p3704_p5, %p125_p8 }
  0x5e   : > { %s5415_s24 = scalar_select %p4559_p11, 1, 0 }
  0x5f   : > { %s4573_s13 = scalar_lea.hbm %s5401_s4, %s3643_s30  ;;  %s360_s12 = scalar_lea.vmem [#allocation10], %s3642_s18 }
  0x60   : > { %s368_s17 = sshll.u32 %s360_s12, 4  ;;  %s4577_s23 = scalar_lea.sflag [#allocation4], %s356_s26  ;;  %s4575_s17 = int_to_ptr.vmem [resolvable:$true] %s368_s17 }
  0x61   : > { %s4263_s16 = scalar_lea.hbm %s4573_s13, 24576  ;;  %p4265_p12 = pneg %p4566_p6 }
  0x62   : > { %p4264_p10 = scmp.ne.s32.totalorder %s4573_s13, %s4263_s16  ;;  %s4268_s30 = scalar_lea.hbm %s5401_s4, 73728 }
  0x63   : > { %p4269_p3 = scmp.lt.s32.totalorder %s4573_s13, %s5401_s4  ;;  %p4270_p4 = scmp.lt.s32.totalorder %s4268_s30, %s4263_s16 }
  0x64   : > { %p4266_p13 = pnand %p4265_p12, %p4264_p10 }
  0x65   : > { %p4271_p7 = por %p4270_p4, %p4269_p3 }
  0x66   : > { %p4267_p0 = pneg %p4266_p13 }
  0x68   : > { %p4272_p1 = pnand %p4271_p7, %p4267_p0 }
  0x6a   : > { %4275 = shalt.err (!%p4272_p1)
}
  0x6b   : > { %s4276_s26 = scalar_lea.vmem %s4575_s17, 24576  ;;  %s4383_s18 = smov [#allocation10]  }
  0x6c   : > { %p4277_p2 = scmp.ne.s32.totalorder %s4575_s17, %s4276_s26  ;;  %s4281_s12 = sshll.u32 %s4383_s18, 4  ;;  %s4282_s12 = int_to_ptr.vmem [resolvable:$false] %s4281_s12 }
  0x6d   : > { %s4283_s21 = scalar_lea.vmem %s4282_s12, 49152  ;;  %p4284_p9 = scmp.lt.s32.totalorder %s4575_s17, %s4282_s12 }
  0x6e   : > { %p4279_p5 = pnand %p4277_p2, %p4265_p12  ;;  %p4285_p10 = scmp.lt.s32.totalorder %s4283_s21, %s4276_s26 }
  0x70   : > { %p4280_p8 = pneg %p4279_p5  ;;  %p4286_p13 = por %p4285_p10, %p4284_p9 }
  0x72   : > { %p4287_p11 = pnand %p4286_p13, %p4280_p8 }
  0x74   : > { %4290 = shalt.err (!%p4287_p11)
}
  0x75   : > { %s4384_s16 = smov 384   ;;  %s4385_s27 = smov 24  }
  0x76   : > { %3697 = dma.hbm_to_vmem [thread:$0]  (!%p4566_p6), %s4573_s13, 24576, %s4575_s17, %s4577_s23, %s4384_s16, %s4384_s16, %s4385_s27  }
  0x77   : > { %p5417_p12 = scmp.ne.s32.totalorder %s5411_s20, 0 }
  0x78   : > { %p5418_p0 = scmp.eq.s32.totalorder (!%p5417_p12), %s4465_s19, 0 }
  0x79   : > { %380 = sbr.rel (%p5417_p12) target bundleno = 2358 (0x936), region = 60 }
  0x7e   : > { %4332 = dma.done.wait (%p5418_p0), [#allocation6], 16   ;;  %p5419_p3 = pmov %p5418_p0 }
  0x7f   : > { %p5420_p4 = pmov %p5418_p0 }
  0x80   : > { %4334 = vsyncadd (%p5419_p3), [#allocation6], 4294967280 }
  0x81   : > { %4336 = dma.done.wait (%p5420_p4), [#allocation4], 1792   ;;  %p5421_p11 = pmov %p5418_p0 }
  0x82   : > { %p5422_p7 = pmov %p5418_p0 }
  0x83   : > { %4338 = vsyncadd (%p5421_p11), [#allocation4], 4294965504 }
  0x84   : > { %4340 = dma.done.wait (%p5422_p7), [#allocation9], 32   ;;  %p5423_p6 = pmov %p5418_p0 }
  0x85   : > { %s394_s20 = sand.u32 1, %s4465_s19   ;;  %s396_s28 = sand.u32 1, %s4365_s14  }
  0x86   : > { %4342 = vsyncadd (%p5423_p6), [#allocation9], 4294967264  ;;  %s3644_s13 = smul.u32 1536, %s396_s28  ;;  %s395_s17 = scalar_lea.sflag [#allocation4], %s394_s20 }
  0x87   : > { %p5424_p1 = scmp.ne.s32.totalorder %s5415_s24, 0 }
  0x88   : > { %s4614_s23 = scalar_lea.vmem [#allocation10], %s3644_s13 }
  0x89   : > { %4344 = dma.done.wait (%p5424_p1), %s395_s17, 24576  }
  0x8a   : > { %4346 = vsyncadd (%p5424_p1), %s395_s17, 4294942720  ;;  %p5425_p2 = pmov %p5418_p0 }
  0x8b   : > { %p5426_p5 = pmov %p5418_p0 }
  0x8c   : > { %4348 = dma.done.wait (%p5425_p2), [#allocation9], 32  }
  0x8d   : > { %4350 = vsyncadd (%p5426_p5), [#allocation9], 4294967264  ;;  %p5427_p8 = pmov %p5418_p0 }
  0x8e   : > { %p5428_p9 = pmov %p5418_p0 }
  0x8f   : > { %4352 = dma.done.wait (%p5427_p8), [#allocation13], 48  }
  0x90   : > { %4354 = vsyncadd (%p5428_p9), [#allocation13], 4294967248 }
  0x91   : > { %415 = sfence }
  0x92   : > { %p5429_p10 = scmp.ne.s32.totalorder %s4465_s19, 0 }
  0x94   : > { %447 = sbr.rel (%p5429_p10) target bundleno = 371 (0x173), region = 92 }
  0x99   : > { %v465_v0 = vld [vmem:[#allocation7 + $0x68] sm:$0x1]  ;;  %vm491_vm0 = vcmask 1040384   ;;  %v464_v1 = vld [vmem:[#allocation7 + $0x60] sm:$0x1]  ;;  %v463_v2 = vld [vmem:[#allocation7 + $0x58] sm:$0xff]  ;;  %v468_v19 = vlaneseq }
  0x9a   : > { %3275 = vmatprep.subr.msk.mxu0 %vm491_vm0, %v465_v0  ;;  %3628 = vmatprep.subr.msk.mxu1 %vm491_vm0, %v465_v0  ;;  %v462_v3 = vld [vmem:[#allocation7 + $0x50] sm:$0xff]  ;;  %v461_v4 = vld [vmem:[#allocation7 + $0x48] sm:$0xff]  ;;  %v460_v5 = vld [vmem:[#allocation7 + $0x40] sm:$0xff]  ;;  %vm478_vm1 = vcmask 400384   ;;  %v4386_v16 = vmov 0.0  }
  0x9b   : > { %3276 = vmatpush1.msk.msra.mxu0 %vm491_vm0, %v464_v1  ;;  %3635 = vmatpush1.msk.msra.mxu1 %vm491_vm0, %v464_v1  ;;  %v459_v6 = vld [vmem:[#allocation7 + $0x38] sm:$0xff]  ;;  %v458_v7 = vld [vmem:[#allocation7 + $0x30] sm:$0xff]  ;;  %v457_v8 = vld [vmem:[#allocation7 + $0x28] sm:$0xff]  ;;  %v469_v20 = vshrl.u32 %v468_v19, 7 }
  0x9c   : > { %518 = vmatprep.subr.mxu0 %v463_v2  ;;  %3629 = vmatprep.subr.mxu1 %v463_v2  ;;  %v456_v9 = vld [vmem:[#allocation7 + $0x20] sm:$0xff]  ;;  %v455_v10 = vld [vmem:[#allocation7 + $0x18] sm:$0xff]  ;;  %v454_v11 = vld [vmem:[#allocation7 + $0x10] sm:$0xff] }
  0x9d   : > { %519 = vmatpush1.msra.mxu0 %v462_v3  ;;  %3636 = vmatpush1.msra.mxu1 %v462_v3  ;;  %v453_v12 = vld [vmem:[#allocation7 + $0x8] sm:$0xff]  ;;  %v452_v13 = vld [vmem:[#allocation7] sm:$0xff]  ;;  %v450_v15 = vld [vmem:[%s5398_s1 + $0x10] sm:$0xff]  ;;  %v470_v21 = vsub.s32 0, %v469_v20  ;;  %v474_v23 = vsub.s32 1, %v469_v20 }
  0x9e   : > { %520 = vmatprep.subr.mxu0 %v461_v4  ;;  %3630 = vmatprep.subr.mxu1 %v461_v4  ;;  %v448_v14 = vld [vmem:[%s5398_s1] sm:$0xff]  ;;  %v449_v17 = vld [vmem:[%s5398_s1 + $0x8] sm:$0xff]  ;;  %v451_v18 = vld [vmem:[%s5398_s1 + $0x18] sm:$0xff] }
  0x9f   : > { %521 = vmatpush1.msra.mxu0 %v460_v5  ;;  %3637 = vmatpush1.msra.mxu1 %v460_v5  ;;  %v466_v22 = vld [vmem:[#allocation8] sm:$0x3] }
  0xa0   : > { %522 = vmatprep.subr.mxu0 %v459_v6  ;;  %3631 = vmatprep.subr.mxu1 %v459_v6  ;;  %v471_v24 = vrot.slane %v466_v22, %v470_v21  ;;  %v475_v25 = vrot.slane %v466_v22, %v474_v23 }
  0xa1   : > { %523 = vmatpush1.msra.mxu0 %v458_v7  ;;  %3638 = vmatpush1.msra.mxu1 %v458_v7 }
  0xa2   : > { %524 = vmatprep.subr.mxu0 %v457_v8  ;;  %3632 = vmatprep.subr.mxu1 %v457_v8 }
  0xa3   : > { %525 = vmatpush1.msra.mxu0 %v456_v9  ;;  %3639 = vmatpush1.msra.mxu1 %v456_v9 }
  0xa4   : > { %526 = vmatprep.subr.mxu0 %v455_v10  ;;  %3633 = vmatprep.subr.mxu1 %v455_v10 }
  0xa5   : > { %527 = vmatpush1.msra.mxu0 %v454_v11  ;;  %3640 = vmatpush1.msra.mxu1 %v454_v11 }
  0xa6   : > { %528 = vmatprep.subr.mxu0 %v453_v12  ;;  %3634 = vmatprep.subr.mxu1 %v453_v12 }
  0xa7   : > { %529 = vmatpush1.msra.mxu0 %v452_v13  ;;  %3641 = vmatpush1.msra.mxu1 %v452_v13 }
  0xa8   : > { %562 = vmatprep.mubr.f32.mxu0 %v4386_v16  ;;  %574 = vmatprep.mubr.f32.mxu1 %v4386_v16 }
  0xa9   : > { %3277 = vmatmul.mubr.msk.f32.vlgmr.msra.gmra.mxu0 %vm478_vm1, %v448_v14  ;;  %3279 = vmatmul.mubr.msk.f32.vlgmr.msra.gmra.mxu1 %vm478_vm1, %v450_v15 }
  0xaa   : > { %568 = vmatprep.mubr.f32.mxu0 %v4386_v16  ;;  %580 = vmatprep.mubr.f32.mxu1 %v4386_v16 }
  0xad   : > { %3278 = vmatmul.mubr.msk.f32.gmra.mxu0 %vm478_vm1, %v449_v17  ;;  %3280 = vmatmul.mubr.msk.f32.gmra.mxu1 %vm478_vm1, %v451_v18 }
 0x169   : > { %v564_v26 = vpop.f32.mrf.mxu0  ;;  %v576_v27 = vpop.f32.mrf.mxu1 }
 0x16a   : > { %v565_v28 = vadd.f32 %v564_v26, %v471_v24  ;;  %v577_v29 = vadd.f32 %v576_v27, %v471_v24 }
 0x16b   : > { %v566_v30 = vpop.f32.mrf.mxu0  ;;  %v578_v31 = vpop.f32.mrf.mxu1 }
 0x16c   : > { %587 = vst [vmem:[#allocation2 + $0x30] sm:$0xff] %v565_v28  ;;  %591 = vst [vmem:[#allocation2 + $0x8] sm:$0xff] %v577_v29  ;;  %v567_v32 = vadd.f32 %v566_v30, %v475_v25  ;;  %v579_v33 = vadd.f32 %v578_v31, %v475_v25 }
 0x16d   : > { %v570_v34 = vpop.f32.mrf.mxu0  ;;  %v582_v35 = vpop.f32.mrf.mxu1 }
 0x16e   : > { %588 = vst [vmem:[#allocation2] sm:$0xff] %v567_v32  ;;  %592 = vst [vmem:[#allocation2 + $0x20] sm:$0xff] %v579_v33  ;;  %v571_v36 = vadd.f32 %v570_v34, %v471_v24  ;;  %v583_v37 = vadd.f32 %v582_v35, %v471_v24 }
 0x16f   : > { %v572_v38 = vpop.f32.mrf.mxu0  ;;  %v584_v39 = vpop.f32.mrf.mxu1 }
 0x170   : > { %589 = vst [vmem:[#allocation2 + $0x18] sm:$0xff] %v571_v36  ;;  %593 = vst [vmem:[#allocation2 + $0x28] sm:$0xff] %v583_v37  ;;  %v573_v40 = vadd.f32 %v572_v38, %v475_v25  ;;  %v585_v41 = vadd.f32 %v584_v39, %v475_v25 }
 0x172   : > { %590 = vst [vmem:[#allocation2 + $0x10] sm:$0xff] %v573_v40  ;;  %594 = vst [vmem:[#allocation2 + $0x38] sm:$0xff] %v585_v41 }
 0x173 PF: > { %v3758_v42 = vld [vmem:[%s4614_s23 + $0x154] ss:$24 sps:$4 sm:$0xff]   ;;  %v3760_v43 = vld [vmem:[%s4614_s23 + $0x150] ss:$24 sps:$4 sm:$0xff]   ;;  %v3761_v44 = vld [vmem:[%s4614_s23 + $0x124] ss:$24 sps:$4 sm:$0xff]  }
 0x174   : > { %992 = vmatprep.subr.bf16.mxu0 %v3758_v42  ;;  %v3763_v45 = vld [vmem:[%s4614_s23 + $0x120] ss:$24 sps:$4 sm:$0xff]   ;;  %v3764_v46 = vld [vmem:[%s4614_s23 + $0xf4] ss:$24 sps:$4 sm:$0xff]   ;;  %v3766_v47 = vld [vmem:[%s4614_s23 + $0xf0] ss:$24 sps:$4 sm:$0xff]  }
 0x175   : > { %993 = vmatpush1.bf16.msra.mxu0 %v3760_v43  ;;  %v3767_v48 = vld [vmem:[%s4614_s23 + $0xc4] ss:$24 sps:$4 sm:$0xff]   ;;  %v3769_v49 = vld [vmem:[%s4614_s23 + $0xc0] ss:$24 sps:$4 sm:$0xff]   ;;  %v3770_v50 = vld [vmem:[%s4614_s23 + $0x94] ss:$24 sps:$4 sm:$0xff]  }
 0x176   : > { %994 = vmatprep.subr.bf16.mxu0 %v3761_v44  ;;  %v3772_v51 = vld [vmem:[%s4614_s23 + $0x90] ss:$24 sps:$4 sm:$0xff]   ;;  %v3773_v52 = vld [vmem:[%s4614_s23 + $0x64] ss:$24 sps:$4 sm:$0xff]   ;;  %v3775_v53 = vld [vmem:[%s4614_s23 + $0x60] ss:$24 sps:$4 sm:$0xff]  }
 0x177   : > { %v3776_v54 = vld [vmem:[%s4614_s23 + $0x34] ss:$24 sps:$4 sm:$0xff]   ;;  %v3778_v58 = vld [vmem:[%s4614_s23 + $0x30] ss:$24 sps:$4 sm:$0xff]   ;;  %v3779_v59 = vld [vmem:[%s4614_s23 + $0x4] ss:$24 sps:$4 sm:$0xff]  }
 0x178   : > { %v597_v55 = vld [vmem:[#allocation2] sm:$0xff]  ;;  %v3781_v61 = vld [vmem:[%s4614_s23] ss:$24 sps:$4 sm:$0xff]   ;;  %v3785_v5 = vld [vmem:[%s4614_s23 + $0x2a4] ss:$24 sps:$4 sm:$0xff]   ;;  %s3591_s16 = sshll.u32 %s4465_s19, 6 }
 0x179   : > { %995 = vmatpush1.bf16.msra.mxu0 %v3763_v45  ;;  %v599_v56 = vld [vmem:[#allocation2 + $0x10] sm:$0xff]  ;;  %v3808_v62 = vld [vmem:[%s4614_s23 + $0x158] ss:$24 sps:$4 sm:$0xff]   ;;  %v3782_v63 = vld [vmem:[%s4614_s23 + $0x2d4] ss:$24 sps:$4 sm:$0xff]   ;;  %s4860_s28 = scalar_lea.vmem %s5402_s5, %s3591_s16  ;;  %vm1320_vm10 = vcmask 261120  }
 0x17a   : > { %996 = vmatprep.subr.bf16.mxu0 %v3764_v46  ;;  %v605_v57 = vpack.c.bf16 %v599_v56, %v597_v55  ;;  %v3806_v60 = vld [vmem:[%s4614_s23 + $0x15c] ss:$24 sps:$4 sm:$0xff]   ;;  %v3809_v0 = vld [vmem:[%s4614_s23 + $0x12c] ss:$24 sps:$4 sm:$0xff]   ;;  %v3811_v1 = vld [vmem:[%s4614_s23 + $0x128] ss:$24 sps:$4 sm:$0xff]  }
 0x17b   : > { %1045 = vmatprep.subr.bf16.mxu1 %v3806_v60  ;;  %v3812_v2 = vld [vmem:[%s4614_s23 + $0xfc] ss:$24 sps:$4 sm:$0xff]   ;;  %v3784_v3 = vld [vmem:[%s4614_s23 + $0x2d0] ss:$24 sps:$4 sm:$0xff]   ;;  %v3787_v6 = vld [vmem:[%s4614_s23 + $0x2a0] ss:$24 sps:$4 sm:$0xff]  }
 0x17c   : > { %1024 = vmatprep.mubr.bf16.mxu0 %v605_v57  ;;  %1077 = vmatprep.mubr.bf16.mxu1 %v605_v57  ;;  %v3814_v4 = vld [vmem:[%s4614_s23 + $0xf8] ss:$24 sps:$4 sm:$0xff]   ;;  %v3788_v7 = vld [vmem:[%s4614_s23 + $0x274] ss:$24 sps:$4 sm:$0xff]   ;;  %v3791_v9 = vld [vmem:[%s4614_s23 + $0x244] ss:$24 sps:$4 sm:$0xff]  }
 0x17d   : > { %997 = vmatpush1.bf16.msra.mxu0 %v3766_v47  ;;  %1046 = vmatpush1.bf16.msra.mxu1 %v3808_v62  ;;  %v3790_v8 = vld [vmem:[%s4614_s23 + $0x270] ss:$24 sps:$4 sm:$0xff]   ;;  %v3793_v10 = vld [vmem:[%s4614_s23 + $0x240] ss:$24 sps:$4 sm:$0xff]   ;;  %v3794_v11 = vld [vmem:[%s4614_s23 + $0x214] ss:$24 sps:$4 sm:$0xff]  }
 0x17e   : > { %998 = vmatprep.subr.bf16.mxu0 %v3767_v48  ;;  %1047 = vmatprep.subr.bf16.mxu1 %v3809_v0  ;;  %v3796_v12 = vld [vmem:[%s4614_s23 + $0x210] ss:$24 sps:$4 sm:$0xff]   ;;  %v3797_v13 = vld [vmem:[%s4614_s23 + $0x1e4] ss:$24 sps:$4 sm:$0xff]   ;;  %v3799_v14 = vld [vmem:[%s4614_s23 + $0x1e0] ss:$24 sps:$4 sm:$0xff]  }
 0x17f   : > { %v3800_v15 = vld [vmem:[%s4614_s23 + $0x1b4] ss:$24 sps:$4 sm:$0xff]   ;;  %v3802_v16 = vld [vmem:[%s4614_s23 + $0x1b0] ss:$24 sps:$4 sm:$0xff]   ;;  %v3803_v17 = vld [vmem:[%s4614_s23 + $0x184] ss:$24 sps:$4 sm:$0xff]  }
 0x180   : > { %v3805_v18 = vld [vmem:[%s4614_s23 + $0x180] ss:$24 sps:$4 sm:$0xff]   ;;  %v598_v20 = vld [vmem:[#allocation2 + $0x18] sm:$0xff]  ;;  %v601_v21 = vld [vmem:[#allocation2 + $0x20] sm:$0xff]  ;;  %s3281_s13 = sshll.u32 %s4465_s19, 1  ;;  %p3585_p13 = scmp.ne.s32.totalorder %s4465_s19, 2 }
 0x181   : > { %999 = vmatpush1.bf16.msra.mxu0 %v3769_v49  ;;  %1048 = vmatpush1.bf16.msra.mxu1 %v3811_v1  ;;  %v596_v19 = vld [vmem:[#allocation2 + $0x30] sm:$0xff]  ;;  %v603_v22 = vld [vmem:[#allocation2 + $0x38] sm:$0xff]  ;;  %v600_v25 = vld [vmem:[#allocation2 + $0x8] sm:$0xff]  ;;  %s1422_s17 = sld [smem:[#allocation3 + %s3281_s13]]  ;;  %s1729_s24 = sadd.s32 1, %s3281_s13 }
 0x182   : > { %1000 = vmatprep.subr.bf16.mxu0 %v3770_v50  ;;  %1049 = vmatprep.subr.bf16.mxu1 %v3812_v2  ;;  %v604_v23 = vpack.c.bf16 %v598_v20, %v596_v19  ;;  %v607_v24 = vpack.c.bf16 %v603_v22, %v601_v21  ;;  %v602_v26 = vld [vmem:[#allocation2 + $0x28] sm:$0xff]  ;;  %v3815_v28 = vld [vmem:[%s4614_s23 + $0xcc] ss:$24 sps:$4 sm:$0xff]   ;;  %v3817_v29 = vld [vmem:[%s4614_s23 + $0xc8] ss:$24 sps:$4 sm:$0xff]   ;;  %s2556_s30 = sld [smem:[#allocation3 + %s1729_s24]] }
 0x183   : > { %v606_v27 = vpack.c.bf16 %v602_v26, %v600_v25  ;;  %v3818_v30 = vld [vmem:[%s4614_s23 + $0x9c] ss:$24 sps:$4 sm:$0xff]   ;;  %v3820_v31 = vld [vmem:[%s4614_s23 + $0x98] ss:$24 sps:$4 sm:$0xff]   ;;  %v3821_v32 = vld [vmem:[%s4614_s23 + $0x6c] ss:$24 sps:$4 sm:$0xff]  }
 0x184   : > { %v3823_v33 = vld [vmem:[%s4614_s23 + $0x68] ss:$24 sps:$4 sm:$0xff]   ;;  %v3824_v34 = vld [vmem:[%s4614_s23 + $0x3c] ss:$24 sps:$4 sm:$0xff]   ;;  %v3826_v35 = vld [vmem:[%s4614_s23 + $0x38] ss:$24 sps:$4 sm:$0xff]  }
 0x185   : > { %1001 = vmatpush1.bf16.msra.mxu0 %v3772_v51  ;;  %1050 = vmatpush1.bf16.msra.mxu1 %v3814_v4  ;;  %v3827_v36 = vld [vmem:[%s4614_s23 + $0xc] ss:$24 sps:$4 sm:$0xff]   ;;  %v3829_v37 = vld [vmem:[%s4614_s23 + $0x8] ss:$24 sps:$4 sm:$0xff]   ;;  %v3830_v38 = vld [vmem:[%s4614_s23 + $0x2dc] ss:$24 sps:$4 sm:$0xff]  }
 0x186   : > { %1002 = vmatprep.subr.bf16.mxu0 %v3773_v52  ;;  %1051 = vmatprep.subr.bf16.mxu1 %v3815_v28  ;;  %v3832_v39 = vld [vmem:[%s4614_s23 + $0x2d8] ss:$24 sps:$4 sm:$0xff]   ;;  %v3833_v40 = vld [vmem:[%s4614_s23 + $0x2ac] ss:$24 sps:$4 sm:$0xff]   ;;  %v3835_v41 = vld [vmem:[%s4614_s23 + $0x2a8] ss:$24 sps:$4 sm:$0xff]  }
 0x187   : > { %v3836_v42 = vld [vmem:[%s4614_s23 + $0x27c] ss:$24 sps:$4 sm:$0xff]   ;;  %v3838_v43 = vld [vmem:[%s4614_s23 + $0x278] ss:$24 sps:$4 sm:$0xff]   ;;  %v3839_v44 = vld [vmem:[%s4614_s23 + $0x24c] ss:$24 sps:$4 sm:$0xff]  }
 0x188   : > { %v3841_v45 = vld [vmem:[%s4614_s23 + $0x248] ss:$24 sps:$4 sm:$0xff]   ;;  %v3842_v46 = vld [vmem:[%s4614_s23 + $0x21c] ss:$24 sps:$4 sm:$0xff]   ;;  %v3844_v47 = vld [vmem:[%s4614_s23 + $0x218] ss:$24 sps:$4 sm:$0xff]  }
 0x189   : > { %1003 = vmatpush1.bf16.msra.mxu0 %v3775_v53  ;;  %1052 = vmatpush1.bf16.msra.mxu1 %v3817_v29  ;;  %v3845_v48 = vld [vmem:[%s4614_s23 + $0x1ec] ss:$24 sps:$4 sm:$0xff]   ;;  %v3847_v49 = vld [vmem:[%s4614_s23 + $0x1e8] ss:$24 sps:$4 sm:$0xff]   ;;  %v3848_v50 = vld [vmem:[%s4614_s23 + $0x1bc] ss:$24 sps:$4 sm:$0xff]  }
 0x18a   : > { %1004 = vmatprep.subr.bf16.mxu0 %v3776_v54  ;;  %1053 = vmatprep.subr.bf16.mxu1 %v3818_v30  ;;  %v3850_v51 = vld [vmem:[%s4614_s23 + $0x1b8] ss:$24 sps:$4 sm:$0xff]   ;;  %v3851_v52 = vld [vmem:[%s4614_s23 + $0x18c] ss:$24 sps:$4 sm:$0xff]   ;;  %v3853_v53 = vld [vmem:[%s4614_s23 + $0x188] ss:$24 sps:$4 sm:$0xff]  }
 0x18b   : > { %v4387_v54 = vmov 0.0  }
 0x18d   : > { %1005 = vmatpush1.bf16.msra.mxu0 %v3778_v58  ;;  %1054 = vmatpush1.bf16.msra.mxu1 %v3820_v31 }
 0x18e   : > { %1006 = vmatprep.subr.bf16.mxu0 %v3779_v59  ;;  %1055 = vmatprep.subr.bf16.mxu1 %v3821_v32 }
 0x191   : > { %1007 = vmatpush1.bf16.msra.mxu0 %v3781_v61  ;;  %1056 = vmatpush1.bf16.msra.mxu1 %v3823_v33 }
 0x192   : > { %1008 = vmatprep.subr.bf16.mxu0 %v3782_v63  ;;  %1057 = vmatprep.subr.bf16.mxu1 %v3824_v34 }
 0x195   : > { %1009 = vmatpush2.bf16.msra.mxu0 %v3784_v3  ;;  %1058 = vmatpush1.bf16.msra.mxu1 %v3826_v35 }
 0x196   : > { %1010 = vmatprep.subr.bf16.mxu0 %v3785_v5  ;;  %1059 = vmatprep.subr.bf16.mxu1 %v3827_v36 }
 0x199   : > { %1011 = vmatpush2.bf16.msra.mxu0 %v3787_v6  ;;  %1060 = vmatpush1.bf16.msra.mxu1 %v3829_v37 }
 0x19a   : > { %1012 = vmatprep.subr.bf16.mxu0 %v3788_v7  ;;  %1061 = vmatprep.subr.bf16.mxu1 %v3830_v38 }
 0x19d   : > { %1013 = vmatpush2.bf16.msra.mxu0 %v3790_v8  ;;  %1062 = vmatpush2.bf16.msra.mxu1 %v3832_v39 }
 0x19e   : > { %1014 = vmatprep.subr.bf16.mxu0 %v3791_v9  ;;  %1063 = vmatprep.subr.bf16.mxu1 %v3833_v40 }
 0x1a1   : > { %1015 = vmatpush2.bf16.msra.mxu0 %v3793_v10  ;;  %1064 = vmatpush2.bf16.msra.mxu1 %v3835_v41 }
 0x1a2   : > { %1016 = vmatprep.subr.bf16.mxu0 %v3794_v11  ;;  %1065 = vmatprep.subr.bf16.mxu1 %v3836_v42 }
 0x1a5   : > { %1017 = vmatpush2.bf16.msra.mxu0 %v3796_v12  ;;  %1066 = vmatpush2.bf16.msra.mxu1 %v3838_v43 }
 0x1a6   : > { %1018 = vmatprep.subr.bf16.mxu0 %v3797_v13  ;;  %1067 = vmatprep.subr.bf16.mxu1 %v3839_v44 }
 0x1a9   : > { %1019 = vmatpush2.bf16.msra.mxu0 %v3799_v14  ;;  %1068 = vmatpush2.bf16.msra.mxu1 %v3841_v45 }
 0x1aa   : > { %1020 = vmatprep.subr.bf16.mxu0 %v3800_v15  ;;  %1069 = vmatprep.subr.bf16.mxu1 %v3842_v46 }
 0x1ad   : > { %1021 = vmatpush2.bf16.msra.mxu0 %v3802_v16  ;;  %1070 = vmatpush2.bf16.msra.mxu1 %v3844_v47 }
 0x1ae   : > { %1022 = vmatprep.subr.bf16.mxu0 %v3803_v17  ;;  %1071 = vmatprep.subr.bf16.mxu1 %v3845_v48 }
 0x1b1   : > { %1023 = vmatpush2.bf16.msra.mxu0 %v3805_v18  ;;  %1072 = vmatpush2.bf16.msra.mxu1 %v3847_v49 }
 0x1b2   : > { %1073 = vmatprep.subr.bf16.mxu1 %v3848_v50 }
 0x1b4   : > { %1025 = vmatmul.mubr.bf16.vlgmr.msra.gmra.mxu0 %v604_v23 }
 0x1b5   : > { %1034 = vmatprep.mubr.bf16.mxu0 %v607_v24  ;;  %1074 = vmatpush2.bf16.msra.mxu1 %v3850_v51 }
 0x1b6   : > { %1075 = vmatprep.subr.bf16.mxu1 %v3851_v52 }
 0x1b9   : > { %1076 = vmatpush2.bf16.msra.mxu1 %v3853_v53 }
 0x1bc   : > { %1035 = vmatmul.mubr.bf16.gmra.mxu0 %v606_v27  ;;  %1078 = vmatmul.mubr.bf16.vlgmr.msra.gmra.mxu1 %v604_v23 }
 0x1bd   : > { %1087 = vmatprep.mubr.bf16.mxu1 %v607_v24 }
 0x1c4   : > { %1088 = vmatmul.mubr.bf16.gmra.mxu1 %v606_v27 }
 0x1c5   : > { %1397 = vmatprep.mubr.f32.mxu1 %v4387_v54 }
 0x274   : > { %v4707_v55 = vpop.f32.mrf.mxu0 }
 0x275   : > { %v4710_v56 = vmul.f32 0.70710677, %v4707_v55 }
 0x276   : > { %v4712_v57 = vpop.f32.mrf.mxu0 }
 0x277   : > { %v4715_v58 = vand.u32 2147483647, %v4710_v56  ;;  %v4718_v59 = vmul.f32 0.70710677, %v4712_v57  ;;  %vm1274_vm9 = vcmp.ge.f32.partialorder %v4710_v56, 0.0 }
 0x278   : > { %v4720_v60 = vpop.f32.mrf.mxu0 }
 0x279   : > { %v1122_v61 = vmul.f32 0.3275911, %v4715_v58  ;;  %v1115_v62 = vand.u32 2147483647, %v4718_v59  ;;  %v4725_v63 = vmul.f32 0.70710677, %v4720_v60 }
 0x27a   : > { %v4727_v0 = vpop.f32.mrf.mxu0  ;;  %v1226_v49 = vsub.f32 0.0, %v4715_v58  ;;  %vm1275_vm3 = vcmp.ge.f32.partialorder %v4718_v59, 0.0 }
 0x27b   : > { %v1130_v1 = vadd.f32 1.0, %v1122_v61  ;;  %v1123_v2 = vmul.f32 0.3275911, %v1115_v62  ;;  %v4730_v3 = vand.u32 2147483647, %v4725_v63  ;;  %v1227_v32 = vsub.f32 0.0, %v1115_v62 }
 0x27c   : > { %v4733_v4 = vmul.f32 0.70710677, %v4727_v0  ;;  %v4735_v5 = vpop.f32.mrf.mxu0  ;;  %vm1276_vm8 = vcmp.ge.f32.partialorder %v4725_v63, 0.0  ;;  %v1101_v56 = vmul.f32 0.5, %v4727_v0 }
 0x27d   : > { %4046 = vrcp.f32 %v1130_v1  ;;  %v1131_v6 = vadd.f32 1.0, %v1123_v2  ;;  %v1124_v7 = vmul.f32 0.3275911, %v4730_v3  ;;  %v4742_v10 = vmul.f32 0.70710677, %v4735_v5 }
 0x27e   : > { %v1117_v8 = vand.u32 2147483647, %v4733_v4  ;;  %v4739_v9 = vpop.f32.mrf.mxu0  ;;  %v1235_v41 = vmul.f32 %v1227_v32, %v1115_v62  ;;  %v1228_v1 = vsub.f32 0.0, %v4730_v3  ;;  %vm1277_vm6 = vcmp.ge.f32.partialorder %v4733_v4, 0.0 }
 0x27f   : > { %4048 = vrcp.f32 %v1131_v6  ;;  %v1132_v11 = vadd.f32 1.0, %v1124_v7  ;;  %v1118_v14 = vand.u32 2147483647, %v4742_v10  ;;  %v4748_v17 = vmul.f32 0.70710677, %v4739_v9 }
 0x280   : > { %v1125_v12 = vmul.f32 0.3275911, %v1117_v8  ;;  %v4744_v13 = vpop.f32.mrf.mxu0  ;;  %v1229_v34 = vsub.f32 0.0, %v1117_v8  ;;  %v1244_v52 = vmul.f32 1.442695, %v1235_v41  ;;  %vm1278_vm5 = vcmp.ge.f32.partialorder %v4742_v10, 0.0 }
 0x281   : > { %4050 = vrcp.f32 %v1132_v11  ;;  %v1126_v16 = vmul.f32 0.3275911, %v1118_v14  ;;  %v4751_v18 = vmul.f32 0.70710677, %v4744_v13  ;;  %v1119_v21 = vand.u32 2147483647, %v4748_v17 }
 0x282   : > { %v1133_v15 = vadd.f32 1.0, %v1125_v12  ;;  %v4753_v19 = vpop.f32.mrf.mxu0  ;;  %v1230_v37 = vsub.f32 0.0, %v1118_v14  ;;  %v1237_v43 = vmul.f32 %v1229_v34, %v1117_v8  ;;  %vm1279_vm4 = vcmp.ge.f32.partialorder %v4748_v17, 0.0 }
 0x283   : > { %v1134_v20 = vadd.f32 1.0, %v1126_v16  ;;  %v1120_v22 = vand.u32 2147483647, %v4751_v18  ;;  %v4758_v23 = vmul.f32 0.70710677, %v4753_v19  ;;  %v1231_v44 = vsub.f32 0.0, %v1119_v21 }
 0x284   : > { %4052 = vrcp.f32 %v1133_v15  ;;  %v1127_v24 = vmul.f32 0.3275911, %v1119_v21  ;;  %v1238_v47 = vmul.f32 %v1230_v37, %v1118_v14  ;;  %v1248_v6 = vmul.f32 1.442695, %v1237_v43 }
 0x285   : > { %4054 = vrcp.f32 %v1134_v20  ;;  %v1128_v25 = vmul.f32 0.3275911, %v1120_v22  ;;  %v4761_v26 = vand.u32 2147483647, %v4758_v23  ;;  %v1232_v61 = vsub.f32 0.0, %v1120_v22 }
 0x286   : > { %v1135_v28 = vadd.f32 1.0, %v1127_v24  ;;  %v1239_v7 = vmul.f32 %v1231_v44, %v1119_v21  ;;  %v1250_v11 = vmul.f32 1.442695, %v1238_v47  ;;  %v1234_v14 = vmul.f32 %v1226_v49, %v4715_v58 }
 0x287   : > { %v1136_v29 = vadd.f32 1.0, %v1128_v25  ;;  %v1129_v31 = vmul.f32 0.3275911, %v4761_v26  ;;  %v1240_v25 = vmul.f32 %v1232_v61, %v1120_v22  ;;  %v1233_v34 = vsub.f32 0.0, %v4761_v26 }
 0x288   : > { %4056 = vrcp.f32 %v1135_v28  ;;  %v1252_v21 = vmul.f32 1.442695, %v1239_v7  ;;  %v1242_v43 = vmul.f32 1.442695, %v1234_v14  ;;  %vm1280_vm2 = vcmp.ge.f32.partialorder %v4751_v18, 0.0 }
 0x289   : > { %4058 = vrcp.f32 %v1136_v29  ;;  %v1137_v35 = vadd.f32 1.0, %v1129_v31  ;;  %v1236_v29 = vmul.f32 %v1228_v1, %v4730_v3  ;;  %v1254_v41 = vmul.f32 1.442695, %v1240_v25 }
 0x28a   : > { %v4763_v27 = vpop.eup %4046  ;;  %vm1281_vm7 = vcmp.ge.f32.partialorder %v4758_v23, 0.0  ;;  %v1103_v63 = vmul.f32 0.5, %v4739_v9 }
 0x28b   : > { %v1154_v30 = vmul.f32 1.0614054, %v4763_v27  ;;  %4060 = vrcp.f32 %v1137_v35  ;;  %v1246_v44 = vmul.f32 1.442695, %v1236_v29 }
 0x28c   : > { %v4767_v33 = vpop.eup %4048  ;;  %4062 = vpow2.f32 %v1244_v52 }
 0x28d   : > { %v1155_v36 = vmul.f32 1.0614054, %v4767_v33  ;;  %v1162_v39 = vadd.f32 -1.4531521, %v1154_v30  ;;  %4064 = vpow2.f32 %v1248_v6 }
 0x28e   : > { %v4770_v38 = vpop.eup %4050  ;;  %4066 = vpow2.f32 %v1250_v11 }
 0x28f   : > { %v1163_v40 = vadd.f32 -1.4531521, %v1155_v36  ;;  %v1156_v42 = vmul.f32 1.0614054, %v4770_v38  ;;  %v1170_v48 = vmul.f32 %v4763_v27, %v1162_v39  ;;  %4068 = vpow2.f32 %v1252_v21 }
 0x290   : > { %4070 = vpow2.f32 %v1254_v41 }
 0x291   : > { %v4773_v45 = vpop.eup %4052  ;;  %v1164_v46 = vadd.f32 -1.4531521, %v1156_v42  ;;  %v1171_v51 = vmul.f32 %v4767_v33, %v1163_v40  ;;  %v1178_v12 = vadd.f32 1.4214138, %v1170_v48  ;;  %4072 = vpow2.f32 %v1246_v44 }
 0x292   : > { %v1157_v50 = vmul.f32 1.0614054, %v4773_v45  ;;  %v4780_v62 = vpop.eup %4054  ;;  %4074 = vpow2.f32 %v1242_v43 }
 0x293   : > { %v1172_v53 = vmul.f32 %v4770_v38, %v1164_v46  ;;  %v1158_v8 = vmul.f32 1.0614054, %v4780_v62  ;;  %v1179_v20 = vadd.f32 1.4214138, %v1171_v51  ;;  %v1186_v35 = vmul.f32 %v4763_v27, %v1178_v12 }
 0x294   : > { %v1165_v2 = vadd.f32 -1.4531521, %v1157_v50  ;;  %v1241_v50 = vmul.f32 %v1233_v34, %v4761_v26 }
 0x295   : > { %v1180_v15 = vadd.f32 1.4214138, %v1172_v53  ;;  %v1166_v24 = vadd.f32 -1.4531521, %v1158_v8  ;;  %v4786_v28 = vpop.eup %4056  ;;  %v1187_v37 = vmul.f32 %v4767_v33, %v1179_v20  ;;  %v1194_v51 = vadd.f32 -0.28449672, %v1186_v35 }
 0x296   : > { %v1173_v16 = vmul.f32 %v4773_v45, %v1165_v2  ;;  %v4789_v31 = vpop.eup %4058  ;;  %v1159_v58 = vmul.f32 1.0614054, %v4786_v28  ;;  %v1256_v14 = vmul.f32 1.442695, %v1241_v50 }
 0x297   : > { %v1174_v32 = vmul.f32 %v4780_v62, %v1166_v24  ;;  %v1188_v22 = vmul.f32 %v4770_v38, %v1180_v15  ;;  %v1160_v3 = vmul.f32 1.0614054, %v4789_v31  ;;  %v1195_v1 = vadd.f32 -0.28449672, %v1187_v37 }
 0x298   : > { %v1181_v30 = vadd.f32 1.4214138, %v1173_v16  ;;  %v1167_v40 = vadd.f32 -1.4531521, %v1159_v58  ;;  %v4799_v42 = vpop.eup %4060  ;;  %v1202_v20 = vmul.f32 %v4763_v27, %v1194_v51  ;;  %4076 = vpow2.f32 %v1256_v14 }
 0x299   : > { %v1182_v39 = vadd.f32 1.4214138, %v1174_v32  ;;  %v1168_v46 = vadd.f32 -1.4531521, %v1160_v3  ;;  %v1196_v52 = vadd.f32 -0.28449672, %v1188_v22  ;;  %v1203_v24 = vmul.f32 %v4767_v33, %v1195_v1  ;;  %v4063_v25 = vpop.eup %4062 }
 0x29a   : > { %v1189_v36 = vmul.f32 %v4773_v45, %v1181_v30  ;;  %v1175_v49 = vmul.f32 %v4786_v28, %v1167_v40  ;;  %v1161_v61 = vmul.f32 1.0614054, %v4799_v42  ;;  %v4065_v58 = vpop.eup %4064  ;;  %v1210_v40 = vadd.f32 0.2548296, %v1202_v20 }
 0x29b   : > { %v1190_v48 = vmul.f32 %v4780_v62, %v1182_v39  ;;  %v1176_v53 = vmul.f32 %v4789_v31, %v1168_v46  ;;  %v1204_v26 = vmul.f32 %v4770_v38, %v1196_v52  ;;  %v4067_v35 = vpop.eup %4066  ;;  %v1211_v37 = vadd.f32 0.2548296, %v1203_v24 }
 0x29c   : > { %v1197_v47 = vadd.f32 -0.28449672, %v1189_v36  ;;  %v1183_v6 = vadd.f32 1.4214138, %v1175_v49  ;;  %v1169_v16 = vadd.f32 -1.4531521, %v1161_v61  ;;  %v4069_v44 = vpop.eup %4068  ;;  %v1218_v1 = vmul.f32 %v4763_v27, %v1210_v40 }
 0x29d   : > { %v1198_v2 = vadd.f32 -0.28449672, %v1190_v48  ;;  %v1184_v7 = vadd.f32 1.4214138, %v1176_v53  ;;  %v1212_v22 = vadd.f32 0.2548296, %v1204_v26  ;;  %v1219_v51 = vmul.f32 %v4767_v33, %v1211_v37  ;;  %v4071_v61 = vpop.eup %4070 }
 0x29e   : > { %v1205_v8 = vmul.f32 %v4773_v45, %v1197_v47  ;;  %v1191_v12 = vmul.f32 %v4786_v28, %v1183_v6  ;;  %v1177_v32 = vmul.f32 %v4799_v42, %v1169_v16  ;;  %v4073_v6 = vpop.eup %4072 }
 0x29f   : > { %v1206_v11 = vmul.f32 %v4780_v62, %v1198_v2  ;;  %v1192_v15 = vmul.f32 %v4789_v31, %v1184_v7  ;;  %v1220_v49 = vmul.f32 %v4770_v38, %v1212_v22  ;;  %v1259_v38 = vmul.f32 %v4063_v25, %v1219_v51 }
 0x2a0   : > { %v1199_v30 = vadd.f32 -0.28449672, %v1191_v12  ;;  %v1213_v34 = vadd.f32 0.2548296, %v1205_v8  ;;  %v1185_v39 = vadd.f32 1.4214138, %v1177_v32  ;;  %v4075_v12 = vpop.eup %4074 }
 0x2a1   : > { %v1214_v29 = vadd.f32 0.2548296, %v1206_v11  ;;  %v1200_v21 = vadd.f32 -0.28449672, %v1192_v15  ;;  %v1260_v11 = vmul.f32 %v4073_v6, %v1220_v49  ;;  %v1258_v33 = vmul.f32 %v4075_v12, %v1218_v1  ;;  %v3859_v6 = vld [vmem:[%s4614_s23 + $0x134] ss:$24 sps:$4 sm:$0xff]  }
 0x2a2   : > { %v1207_v36 = vmul.f32 %v4786_v28, %v1199_v30  ;;  %v1221_v46 = vmul.f32 %v4773_v45, %v1213_v34  ;;  %v1193_v48 = vmul.f32 %v4799_v42, %v1185_v39  ;;  %v1102_v51 = vmul.f32 0.5, %v4735_v5  ;;  %v3860_v12 = vld [vmem:[%s4614_s23 + $0x100] ss:$24 sps:$4 sm:$0xff]  }
 0x2a3   : > { %v1208_v3 = vmul.f32 %v4789_v31, %v1200_v21  ;;  %v1222_v41 = vmul.f32 %v4780_v62, %v1214_v29  ;;  %v1268_v27 = vsub.f32 1.0, %v1260_v11  ;;  %v1267_v29 = vsub.f32 1.0, %v1259_v38  ;;  %v1318_v11 = vld [vmem:[%s4860_s28 + $0x10] sm:$0xff]  ;;  %v3865_v38 = vld [vmem:[%s4614_s23 + $0xd4] ss:$24 sps:$4 sm:$0xff]  }
 0x2a4   : > { %v1215_v43 = vadd.f32 0.2548296, %v1207_v36  ;;  %v1201_v53 = vadd.f32 -0.28449672, %v1193_v48  ;;  %v1261_v7 = vmul.f32 %v4065_v58, %v1221_v46  ;;  %v1266_v32 = vsub.f32 1.0, %v1258_v33 }
 0x2a5   : > { %v1216_v47 = vadd.f32 0.2548296, %v1208_v3  ;;  %v1262_v62 = vmul.f32 %v4067_v35, %v1222_v41  ;;  %v4077_v20 = vpop.eup %4076  ;;  %v1284_v35 = vsub.f32 0.0, %v1268_v27  ;;  %v1283_v36 = vsub.f32 0.0, %v1267_v29  ;;  %v3866_v33 = vld [vmem:[%s4614_s23 + $0xa0] ss:$24 sps:$4 sm:$0xff]  }
 0x2a6   : > { %v1223_v50 = vmul.f32 %v4786_v28, %v1215_v43  ;;  %v1209_v8 = vmul.f32 %v4799_v42, %v1201_v53  ;;  %v1282_v37 = vsub.f32 0.0, %v1266_v32  ;;  %v1100_v53 = vmul.f32 0.5, %v4720_v60 }
 0x2a7   : > { %v1224_v52 = vmul.f32 %v4789_v31, %v1216_v47  ;;  %v1270_v15 = vsub.f32 1.0, %v1262_v62  ;;  %v1269_v31 = vsub.f32 1.0, %v1261_v7  ;;  %v1292_v43 = vsel %vm1276_vm8, %v1268_v27, %v1284_v35  ;;  %v1317_v7 = vld [vmem:[%s4860_s28 + $0x8] sm:$0xff]  ;;  %v3887_v35 = vld [vmem:[%s4614_s23 + $0x250] ss:$24 sps:$4 sm:$0xff]  }
 0x2a8   : > { %v1263_v2 = vmul.f32 %v4069_v44, %v1223_v50  ;;  %v1217_v26 = vadd.f32 0.2548296, %v1209_v8  ;;  %v1105_v44 = vmul.f32 0.5, %v4753_v19  ;;  %v1291_v10 = vsel %vm1275_vm3, %v1267_v29, %v1283_v36  ;;  %v3862_v8 = vld [vmem:[%s4614_s23 + $0x104] ss:$24 sps:$4 sm:$0xff]  }
 0x2a9   : > { %v1264_v45 = vmul.f32 %v4071_v61, %v1224_v52  ;;  %v1286_v58 = vsub.f32 0.0, %v1270_v15  ;;  %v1285_v34 = vsub.f32 0.0, %v1269_v31  ;;  %v1104_v47 = vmul.f32 0.5, %v4744_v13  ;;  %v3877_v27 = vld [vmem:[%s4614_s23 + $0x14] ss:$24 sps:$4 sm:$0xff]  }
 0x2aa   : > { %v1271_v14 = vsub.f32 1.0, %v1263_v2  ;;  %v1225_v16 = vmul.f32 %v4799_v42, %v1217_v26  ;;  %v1290_v23 = vsel %vm1274_vm9, %v1266_v32, %v1282_v37  ;;  %v1300_v50 = vadd.f32 1.0, %v1292_v43  ;;  %v1316_v2 = vld [vmem:[%s4860_s28] sm:$0xff]  ;;  %v3868_v26 = vld [vmem:[%s4614_s23 + $0xa4] ss:$24 sps:$4 sm:$0xff]  }
 0x2ab   : > { %v1272_v28 = vsub.f32 1.0, %v1264_v45  ;;  %v1294_v39 = vsel %vm1278_vm5, %v1270_v15, %v1286_v58  ;;  %v1293_v18 = vsel %vm1277_vm6, %v1269_v31, %v1285_v34  ;;  %v1299_v19 = vadd.f32 1.0, %v1291_v10  ;;  %v3857_v45 = vld [vmem:[%s4614_s23 + $0x130] ss:$24 sps:$4 sm:$0xff]   ;;  %v3871_v15 = vld [vmem:[%s4614_s23 + $0x74] ss:$24 sps:$4 sm:$0xff]  }
 0x2ac   : > { %v1287_v30 = vsub.f32 0.0, %v1271_v14  ;;  %v1265_v21 = vmul.f32 %v4077_v20, %v1225_v16  ;;  %v1302_v4 = vadd.f32 1.0, %v1294_v39  ;;  %v1301_v48 = vadd.f32 1.0, %v1293_v18  ;;  %v3869_v31 = vld [vmem:[%s4614_s23 + $0x70] ss:$24 sps:$4 sm:$0xff]  }
 0x2ad   : > { %v1288_v24 = vsub.f32 0.0, %v1272_v28  ;;  %v1298_v13 = vadd.f32 1.0, %v1290_v23  ;;  %v1099_v5 = vmul.f32 0.5, %v4712_v57  ;;  %v1098_v60 = vmul.f32 0.5, %v4707_v55  ;;  %v3856_v57 = vld [vmem:[%s4614_s23 + $0x164] ss:$24 sps:$4 sm:$0xff]  }
 0x2ae   : > { %v1273_v25 = vsub.f32 1.0, %v1265_v21  ;;  %v1295_v42 = vsel %vm1279_vm4, %v1271_v14, %v1287_v30  ;;  %v4850_v9 = vmul.f32 %v1302_v4, %v1102_v51  ;;  %v4854_v61 = vmul.f32 %v1301_v48, %v1101_v56  ;;  %v3854_v55 = vld [vmem:[%s4614_s23 + $0x160] ss:$24 sps:$4 sm:$0xff]   ;;  %v1319_v14 = vld [vmem:[%s4860_s28 + $0x18] sm:$0xff] }
 0x2af   : > { %v1296_v22 = vsel %vm1280_vm2, %v1272_v28, %v1288_v24  ;;  %v1303_v17 = vadd.f32 1.0, %v1295_v42  ;;  %v4863_v0 = vmul.f32 %v1300_v50, %v1100_v53  ;;  %v4866_v1 = vmul.f32 %v1299_v19, %v1099_v5  ;;  %v3863_v28 = vld [vmem:[%s4614_s23 + $0xd0] ss:$24 sps:$4 sm:$0xff]   ;;  %v3874_v16 = vld [vmem:[%s4614_s23 + $0x44] ss:$24 sps:$4 sm:$0xff]  }
 0x2b0   : > { %v1289_v3 = vsub.f32 0.0, %v1273_v25  ;;  %v1304_v40 = vadd.f32 1.0, %v1296_v22  ;;  %v4870_v62 = vmul.f32 %v1298_v13, %v1098_v60  ;;  %v3872_v20 = vld [vmem:[%s4614_s23 + $0x40] ss:$24 sps:$4 sm:$0xff]   ;;  %v3875_v24 = vld [vmem:[%s4614_s23 + $0x10] ss:$24 sps:$4 sm:$0xff]  }
 0x2b1   : > { %v4846_v59 = vmul.f32 %v1303_v17, %v1103_v63  ;;  %v3880_v29 = vld [vmem:[%s4614_s23 + $0x2e4] ss:$24 sps:$4 sm:$0xff]   ;;  %v3878_v30 = vld [vmem:[%s4614_s23 + $0x2e0] ss:$24 sps:$4 sm:$0xff]   ;;  %v3883_v21 = vld [vmem:[%s4614_s23 + $0x2b4] ss:$24 sps:$4 sm:$0xff]  }
 0x2b2   : > { %v1297_v41 = vsel %vm1281_vm7, %v1273_v25, %v1289_v3  ;;  %v4842_v52 = vmul.f32 %v1304_v40, %v1104_v47  ;;  %v3881_v32 = vld [vmem:[%s4614_s23 + $0x2b0] ss:$24 sps:$4 sm:$0xff]   ;;  %v3886_v58 = vld [vmem:[%s4614_s23 + $0x284] ss:$24 sps:$4 sm:$0xff]   ;;  %v3884_v34 = vld [vmem:[%s4614_s23 + $0x280] ss:$24 sps:$4 sm:$0xff]  }
 0x2b3   : > { %v1305_v46 = vadd.f32 1.0, %v1297_v41  ;;  %v3889_v25 = vld [vmem:[%s4614_s23 + $0x254] ss:$24 sps:$4 sm:$0xff]   ;;  %v3892_v22 = vld [vmem:[%s4614_s23 + $0x224] ss:$24 sps:$4 sm:$0xff]  }
 0x2b4   : > { %v3890_v36 = vld [vmem:[%s4614_s23 + $0x220] ss:$24 sps:$4 sm:$0xff]   ;;  %v3895_v42 = vld [vmem:[%s4614_s23 + $0x1f4] ss:$24 sps:$4 sm:$0xff]   ;;  %v3893_v3 = vld [vmem:[%s4614_s23 + $0x1f0] ss:$24 sps:$4 sm:$0xff]  }
 0x2b5   : > { %v4839_v49 = vmul.f32 %v1305_v46, %v1105_v44  ;;  %v3898_v37 = vld [vmem:[%s4614_s23 + $0x1c4] ss:$24 sps:$4 sm:$0xff]   ;;  %v3896_v39 = vld [vmem:[%s4614_s23 + $0x1c0] ss:$24 sps:$4 sm:$0xff]   ;;  %v3901_v18 = vld [vmem:[%s4614_s23 + $0x194] ss:$24 sps:$4 sm:$0xff]  }
 0x2b6   : > { %v3899_v40 = vld [vmem:[%s4614_s23 + $0x190] ss:$24 sps:$4 sm:$0xff]   ;;  %v3904_v43 = vld [vmem:[%s4614_s23 + $0x454] ss:$24 sps:$4 sm:$0xff]   ;;  %v3910_v44 = vld [vmem:[%s4614_s23 + $0x424] ss:$24 sps:$4 sm:$0xff]  }
 0x2b7   : > { %1357 = vmatprep.subr.mxu1 %v4839_v49  ;;  %v3902_v41 = vld [vmem:[%s4614_s23 + $0x450] ss:$24 sps:$4 sm:$0xff]   ;;  %v3907_v17 = vld [vmem:[%s4614_s23 + $0x45c] ss:$24 sps:$4 sm:$0xff]   ;;  %2127 = vmatprep.subr.bf16.mxu0 %v3904_v43  ;;  %v3908_v46 = vld [vmem:[%s4614_s23 + $0x420] ss:$24 sps:$4 sm:$0xff]  }
 0x2b8   : > { %1358 = vmatpush1.msra.mxu1 %v4842_v52  ;;  %2128 = vmatpush1.bf16.msra.mxu0 %v3902_v41  ;;  %v3916_v10 = vld [vmem:[%s4614_s23 + $0x3f4] ss:$24 sps:$4 sm:$0xff]   ;;  %v3914_v4 = vld [vmem:[%s4614_s23 + $0x3f0] ss:$24 sps:$4 sm:$0xff]   ;;  %v3922_v47 = vld [vmem:[%s4614_s23 + $0x3c4] ss:$24 sps:$4 sm:$0xff]  }
 0x2b9   : > { %1359 = vmatprep.subr.mxu1 %v4846_v59  ;;  %2129 = vmatprep.subr.bf16.mxu0 %v3910_v44  ;;  %v3920_v23 = vld [vmem:[%s4614_s23 + $0x3c0] ss:$24 sps:$4 sm:$0xff]   ;;  %v3928_v48 = vld [vmem:[%s4614_s23 + $0x394] ss:$24 sps:$4 sm:$0xff]   ;;  %v3926_v63 = vld [vmem:[%s4614_s23 + $0x390] ss:$24 sps:$4 sm:$0xff]  }
 0x2ba   : > { %1360 = vmatpush1.msra.mxu1 %v4850_v9  ;;  %v3934_v50 = vld [vmem:[%s4614_s23 + $0x364] ss:$24 sps:$4 sm:$0xff]   ;;  %v3932_v51 = vld [vmem:[%s4614_s23 + $0x360] ss:$24 sps:$4 sm:$0xff]   ;;  %v3940_v19 = vld [vmem:[%s4614_s23 + $0x334] ss:$24 sps:$4 sm:$0xff]  }
 0x2bb   : > { %1361 = vmatprep.subr.mxu1 %v4854_v61  ;;  %v3938_v56 = vld [vmem:[%s4614_s23 + $0x330] ss:$24 sps:$4 sm:$0xff]   ;;  %v3946_v13 = vld [vmem:[%s4614_s23 + $0x304] ss:$24 sps:$4 sm:$0xff]   ;;  %v3944_v53 = vld [vmem:[%s4614_s23 + $0x300] ss:$24 sps:$4 sm:$0xff]  }
 0x2bc   : > { %1362 = vmatpush1.msra.mxu1 %v4863_v0  ;;  %2130 = vmatpush1.bf16.msra.mxu0 %v3908_v46  ;;  %v3952_v5 = vld [vmem:[%s4614_s23 + $0x5d4] ss:$24 sps:$4 sm:$0xff]   ;;  %v3950_v60 = vld [vmem:[%s4614_s23 + $0x5d0] ss:$24 sps:$4 sm:$0xff]  }
 0x2bd   : > { %1363 = vmatprep.subr.mxu1 %v4866_v1  ;;  %2131 = vmatprep.subr.bf16.mxu0 %v3916_v10 }
 0x2be   : > { %1364 = vmatpush1.msra.mxu1 %v4870_v62 }
 0x2bf   : > { %3347 = vmatmul.mubr.msk.f32.vlgmr.msra.gmra.mxu1 %vm1320_vm10, %v1316_v2  ;;  %1668 = vmatprep.subr.bf16.mxu1 %v3856_v57  ;;  %v3958_v57 = vld [vmem:[%s4614_s23 + $0x5a4] ss:$24 sps:$4 sm:$0xff]   ;;  %v3956_v2 = vld [vmem:[%s4614_s23 + $0x5a0] ss:$24 sps:$4 sm:$0xff]  }
 0x2c0   : > { %1403 = vmatprep.mubr.f32.mxu1 %v4387_v54  ;;  %1669 = vmatpush1.bf16.msra.mxu1 %v3854_v55  ;;  %v3964_v55 = vld [vmem:[%s4614_s23 + $0x574] ss:$24 sps:$4 sm:$0xff]  }
 0x2c1   : > { %1670 = vmatprep.subr.bf16.mxu1 %v3859_v6  ;;  %2132 = vmatpush1.bf16.msra.mxu0 %v3914_v4  ;;  %v3962_v6 = vld [vmem:[%s4614_s23 + $0x570] ss:$24 sps:$4 sm:$0xff]  }
 0x2c2   : > { %2133 = vmatprep.subr.bf16.mxu0 %v3922_v47 }
 0x2c3   : > { %3348 = vmatmul.mubr.msk.f32.gmra.mxu1 %vm1320_vm10, %v1317_v7  ;;  %v3970_v7 = vld [vmem:[%s4614_s23 + $0x544] ss:$24 sps:$4 sm:$0xff]  }
 0x2c4   : > { %1409 = vmatprep.mubr.f32.mxu1 %v4387_v54  ;;  %1671 = vmatpush1.bf16.msra.mxu1 %v3857_v45  ;;  %v3968_v45 = vld [vmem:[%s4614_s23 + $0x540] ss:$24 sps:$4 sm:$0xff]  }
 0x2c5   : > { %1672 = vmatprep.subr.bf16.mxu1 %v3862_v8  ;;  %2134 = vmatpush1.bf16.msra.mxu0 %v3920_v23  ;;  %v1079_v8 = vpop.f32.mrf.mxu1 }
 0x2c6   : > { %2135 = vmatprep.subr.bf16.mxu0 %v3928_v48 }
 0x2c7   : > { %3349 = vmatmul.mubr.msk.f32.gmra.mxu1 %vm1320_vm10, %v1318_v11  ;;  %v1081_v11 = vpop.f32.mrf.mxu1 }
 0x2c8   : > { %1415 = vmatprep.mubr.f32.mxu1 %v4387_v54  ;;  %1673 = vmatpush1.bf16.msra.mxu1 %v3860_v12 }
 0x2c9   : > { %1674 = vmatprep.subr.bf16.mxu1 %v3865_v38  ;;  %2136 = vmatpush1.bf16.msra.mxu0 %v3926_v63  ;;  %v1083_v12 = vpop.f32.mrf.mxu1 }
 0x2ca   : > { %2137 = vmatprep.subr.bf16.mxu0 %v3934_v50 }
 0x2cb   : > { %3350 = vmatmul.mubr.msk.f32.gmra.mxu1 %vm1320_vm10, %v1319_v14  ;;  %v1085_v38 = vpop.f32.mrf.mxu1 }
 0x2cc   : > { %1675 = vmatpush1.bf16.msra.mxu1 %v3863_v28 }
 0x2cd   : > { %1676 = vmatprep.subr.bf16.mxu1 %v3868_v26  ;;  %2138 = vmatpush1.bf16.msra.mxu0 %v3932_v51  ;;  %v4942_v14 = vpop.f32.mrf.mxu1 }
 0x2ce   : > { %2139 = vmatprep.subr.bf16.mxu0 %v3940_v19 }
 0x2cf   : > { %v4944_v28 = vpop.f32.mrf.mxu1 }
 0x2d0   : > { %1677 = vmatpush1.bf16.msra.mxu1 %v3866_v33 }
 0x2d1   : > { %1678 = vmatprep.subr.bf16.mxu1 %v3871_v15  ;;  %2140 = vmatpush1.bf16.msra.mxu0 %v3938_v56  ;;  %v4946_v26 = vpop.f32.mrf.mxu1 }
 0x2d2   : > { %2141 = vmatprep.subr.bf16.mxu0 %v3946_v13 }
 0x2d3   : > { %v4951_v33 = vpop.f32.mrf.mxu1 }
 0x2d4   : > { %1679 = vmatpush1.bf16.msra.mxu1 %v3869_v31 }
 0x2d5   : > { %1680 = vmatprep.subr.bf16.mxu1 %v3874_v16  ;;  %2142 = vmatpush1.bf16.msra.mxu0 %v3944_v53 }
 0x2d6   : > { %2143 = vmatprep.subr.bf16.mxu0 %v3952_v5 }
 0x2d8   : > { %1681 = vmatpush1.bf16.msra.mxu1 %v3872_v20 }
 0x2d9   : > { %1682 = vmatprep.subr.bf16.mxu1 %v3877_v27  ;;  %2144 = vmatpush2.bf16.msra.mxu0 %v3950_v60 }
 0x2da   : > { %2145 = vmatprep.subr.bf16.mxu0 %v3958_v57 }
 0x2dc   : > { %1683 = vmatpush1.bf16.msra.mxu1 %v3875_v24 }
 0x2dd   : > { %1684 = vmatprep.subr.bf16.mxu1 %v3880_v29  ;;  %2146 = vmatpush2.bf16.msra.mxu0 %v3956_v2 }
 0x2de   : > { %2147 = vmatprep.subr.bf16.mxu0 %v3964_v55 }
 0x2e0   : > { %1685 = vmatpush2.bf16.msra.mxu1 %v3878_v30 }
 0x2e1   : > { %1686 = vmatprep.subr.bf16.mxu1 %v3883_v21  ;;  %2148 = vmatpush2.bf16.msra.mxu0 %v3962_v6  ;;  %v1447_v21 = vstv %s1422_s17 }
 0x2e2   : > { %2149 = vmatprep.subr.bf16.mxu0 %v3970_v7  ;;  %v3913_v7 = vld [vmem:[%s4614_s23 + $0x42c] ss:$24 sps:$4 sm:$0xff]  }
 0x2e4   : > { %1687 = vmatpush2.bf16.msra.mxu1 %v3881_v32 }
 0x2e5   : > { %1688 = vmatprep.subr.bf16.mxu1 %v3886_v58  ;;  %2150 = vmatpush2.bf16.msra.mxu0 %v3968_v45 }
 0x2e8   : > { %1689 = vmatpush2.bf16.msra.mxu1 %v3884_v34 }
 0x2e9   : > { %1690 = vmatprep.subr.bf16.mxu1 %v3889_v25 }
 0x2ec   : > { %1691 = vmatpush2.bf16.msra.mxu1 %v3887_v35 }
 0x2ed   : > { %1692 = vmatprep.subr.bf16.mxu1 %v3892_v22 }
 0x2f0   : > { %1693 = vmatpush2.bf16.msra.mxu1 %v3890_v36 }
 0x2f1   : > { %1694 = vmatprep.subr.bf16.mxu1 %v3895_v42 }
 0x2f4   : > { %1695 = vmatpush2.bf16.msra.mxu1 %v3893_v3 }
 0x2f5   : > { %1696 = vmatprep.subr.bf16.mxu1 %v3898_v37 }
 0x2f8   : > { %1697 = vmatpush2.bf16.msra.mxu1 %v3896_v39 }
 0x2f9   : > { %1698 = vmatprep.subr.bf16.mxu1 %v3901_v18 }
 0x2fc   : > { %1699 = vmatpush2.bf16.msra.mxu1 %v3899_v40 }
 0x2fd   : > { %2180 = vmatprep.subr.bf16.mxu1 %v3907_v17 }
 0x37f   : > { %v1399_v15 = vpop.f32.mrf.mxu1 }
 0x380   : > { %v1423_v31 = vsub.f32 %v4870_v62, %v1399_v15  ;;  %v1431_v16 = vmul.f32 %v1399_v15, %v4870_v62  ;;  %v3919_v15 = vld [vmem:[%s4614_s23 + $0x3fc] ss:$24 sps:$4 sm:$0xff]  }
 0x381   : > { %v1401_v20 = vpop.f32.mrf.mxu1 }
 0x382   : > { %v1424_v27 = vsub.f32 %v4866_v1, %v1401_v20  ;;  %v1432_v24 = vmul.f32 %v1401_v20, %v4866_v1  ;;  %v1439_v29 = vsub.f32 %v1431_v16, %v1423_v31 }
 0x383   : > { %v1405_v30 = vpop.f32.mrf.mxu1 }
 0x384   : > { %v1440_v32 = vsub.f32 %v1432_v24, %v1424_v27  ;;  %v1425_v58 = vsub.f32 %v4863_v0, %v1405_v30  ;;  %v1433_v34 = vmul.f32 %v1405_v30, %v4863_v0  ;;  %v1448_v36 = vmul.f32 %v1447_v21, %v1439_v29  ;;  %v3917_v24 = vld [vmem:[%s4614_s23 + $0x3f8] ss:$24 sps:$4 sm:$0xff]   ;;  %v3925_v30 = vld [vmem:[%s4614_s23 + $0x3cc] ss:$24 sps:$4 sm:$0xff]  }
 0x385   : > { %v1407_v25 = vpop.f32.mrf.mxu1 }
 0x386   : > { %v1441_v35 = vsub.f32 %v1433_v34, %v1425_v58  ;;  %v1426_v22 = vsub.f32 %v4854_v61, %v1407_v25  ;;  %v1449_v42 = vmul.f32 %v1447_v21, %v1440_v32  ;;  %v1434_v62 = vmul.f32 %v1407_v25, %v4854_v61  ;;  %v3943_v32 = vld [vmem:[%s4614_s23 + $0x33c] ss:$24 sps:$4 sm:$0xff]   ;;  %v3949_v34 = vld [vmem:[%s4614_s23 + $0x30c] ss:$24 sps:$4 sm:$0xff]   ;;  %v3947_v25 = vld [vmem:[%s4614_s23 + $0x308] ss:$24 sps:$4 sm:$0xff]  }
 0x387   : > { %v1411_v3 = vpop.f32.mrf.mxu1  ;;  %v1456_v17 = vadd.f32 %v1448_v36, %v1423_v31  ;;  %v3961_v36 = vld [vmem:[%s4614_s23 + $0x5ac] ss:$24 sps:$4 sm:$0xff]  }
 0x388   : > { %v1450_v37 = vmul.f32 %v1447_v21, %v1441_v35  ;;  %v1427_v1 = vsub.f32 %v4850_v9, %v1411_v3  ;;  %v1442_v39 = vsub.f32 %v1434_v62, %v1426_v22  ;;  %v1435_v18 = vmul.f32 %v1411_v3, %v4850_v9  ;;  %v3955_v35 = vld [vmem:[%s4614_s23 + $0x5dc] ss:$24 sps:$4 sm:$0xff]   ;;  %v3965_v3 = vld [vmem:[%s4614_s23 + $0x578] ss:$24 sps:$4 sm:$0xff]  }
 0x389   : > { %v1413_v40 = vpop.f32.mrf.mxu1  ;;  %v1457_v44 = vadd.f32 %v1449_v42, %v1424_v27  ;;  %v1464_v53 = vmul.f32 %v1456_v17, %v1079_v8  ;;  %v3959_v42 = vld [vmem:[%s4614_s23 + $0x5a8] ss:$24 sps:$4 sm:$0xff]   ;;  %v3967_v62 = vld [vmem:[%s4614_s23 + $0x57c] ss:$24 sps:$4 sm:$0xff]  }
 0x38a   : > { %v1458_v41 = vadd.f32 %v1450_v37, %v1425_v58  ;;  %v1428_v43 = vsub.f32 %v4846_v59, %v1413_v40  ;;  %v1436_v0 = vmul.f32 %v1413_v40, %v4846_v59  ;;  %v1451_v46 = vmul.f32 %v1447_v21, %v1442_v39  ;;  %v3941_v58 = vld [vmem:[%s4614_s23 + $0x338] ss:$24 sps:$4 sm:$0xff]   ;;  %v3973_v37 = vld [vmem:[%s4614_s23 + $0x54c] ss:$24 sps:$4 sm:$0xff]  }
 0x38b   : > { %v1417_v10 = vpop.f32.mrf.mxu1  ;;  %v1443_v4 = vsub.f32 %v1435_v18, %v1427_v1  ;;  %v1465_v19 = vmul.f32 %v1457_v44, %v1081_v11  ;;  %v3976_v39 = vld [vmem:[%s4614_s23 + $0x514] ss:$24 sps:$4 sm:$0xff]   ;;  %v3974_v40 = vld [vmem:[%s4614_s23 + $0x510] ss:$24 sps:$4 sm:$0xff]   ;;  %v3980_v17 = vld [vmem:[%s4614_s23 + $0x4e0] ss:$24 sps:$4 sm:$0xff]  }
 0x38c   : > { %v1444_v47 = vsub.f32 %v1436_v0, %v1428_v43  ;;  %v1429_v61 = vsub.f32 %v4842_v52, %v1417_v10  ;;  %v1437_v23 = vmul.f32 %v1417_v10, %v4842_v52  ;;  %v1459_v48 = vadd.f32 %v1451_v46, %v1426_v22  ;;  %v3905_v52 = vld [vmem:[%s4614_s23 + $0x458] ss:$24 sps:$4 sm:$0xff]   ;;  %v3979_v18 = vld [vmem:[%s4614_s23 + $0x51c] ss:$24 sps:$4 sm:$0xff]   ;;  %2151 = vmatprep.subr.bf16.mxu0 %v3976_v39  ;;  %v3985_v0 = vld [vmem:[%s4614_s23 + $0x4ec] ss:$24 sps:$4 sm:$0xff]  }
 0x38d   : > { %v1419_v63 = vpop.f32.mrf.mxu1  ;;  %v1466_v9 = vmul.f32 %v1458_v41, %v1083_v12  ;;  %v1452_v5 = vmul.f32 %v1447_v21, %v1443_v4  ;;  %v3953_v22 = vld [vmem:[%s4614_s23 + $0x5d8] ss:$24 sps:$4 sm:$0xff]   ;;  %2152 = vmatpush2.bf16.msra.mxu0 %v3974_v40  ;;  %v3983_v44 = vld [vmem:[%s4614_s23 + $0x4e8] ss:$24 sps:$4 sm:$0xff]   ;;  %v3988_v46 = vld [vmem:[%s4614_s23 + $0x4b4] ss:$24 sps:$4 sm:$0xff]  }
 0x38e   : > { %v1445_v50 = vsub.f32 %v1437_v23, %v1429_v61  ;;  %v1430_v51 = vsub.f32 %v4839_v49, %v1419_v63  ;;  %v1467_v59 = vmul.f32 %v1459_v48, %v1085_v38  ;;  %v1453_v56 = vmul.f32 %v1447_v21, %v1444_v47  ;;  %v3977_v41 = vld [vmem:[%s4614_s23 + $0x518] ss:$24 sps:$4 sm:$0xff]   ;;  %v3991_v10 = vld [vmem:[%s4614_s23 + $0x4bc] ss:$24 sps:$4 sm:$0xff]   ;;  %v3997_v23 = vld [vmem:[%s4614_s23 + $0x48c] ss:$24 sps:$4 sm:$0xff]  }
 0x38f   : > { %v1438_v13 = vmul.f32 %v1419_v63, %v4839_v49  ;;  %v1504_v55 = vpack.c.bf16 %v1466_v9, %v1464_v53  ;;  %v1460_v11 = vadd.f32 %v1452_v5, %v1427_v1  ;;  %v3911_v49 = vld [vmem:[%s4614_s23 + $0x428] ss:$24 sps:$4 sm:$0xff]   ;;  %v3989_v47 = vld [vmem:[%s4614_s23 + $0x4b8] ss:$24 sps:$4 sm:$0xff]  }
 0x390   : > { %v1454_v60 = vmul.f32 %v1447_v21, %v1445_v50  ;;  %v1505_v2 = vpack.c.bf16 %v1467_v59, %v1465_v19  ;;  %v1461_v45 = vadd.f32 %v1453_v56, %v1428_v43  ;;  %v3971_v1 = vld [vmem:[%s4614_s23 + $0x548] ss:$24 sps:$4 sm:$0xff]   ;;  %v3982_v43 = vld [vmem:[%s4614_s23 + $0x4e4] ss:$24 sps:$4 sm:$0xff]  }
 0x391   : > { %v1446_v57 = vsub.f32 %v1438_v13, %v1430_v51  ;;  %v1468_v20 = vmul.f32 %v1460_v11, %v4942_v14  ;;  %v3929_v14 = vld [vmem:[%s4614_s23 + $0x398] ss:$24 sps:$4 sm:$0xff]   ;;  %2153 = vmatprep.subr.bf16.mxu0 %v3982_v43  ;;  %v3995_v63 = vld [vmem:[%s4614_s23 + $0x488] ss:$24 sps:$4 sm:$0xff]  }
 0x392   : > { %v1462_v6 = vadd.f32 %v1454_v60, %v1429_v61  ;;  %1700 = vmatprep.mubr.bf16.mxu1 %v1505_v2  ;;  %v1469_v31 = vmul.f32 %v1461_v45, %v4944_v28  ;;  %v3923_v28 = vld [vmem:[%s4614_s23 + $0x3c8] ss:$24 sps:$4 sm:$0xff]   ;;  %2154 = vmatpush2.bf16.msra.mxu0 %v3980_v17  ;;  %v3994_v61 = vld [vmem:[%s4614_s23 + $0x484] ss:$24 sps:$4 sm:$0xff]  }
 0x393   : > { %v1455_v12 = vmul.f32 %v1447_v21, %v1446_v57  ;;  %1701 = vmatmul.mubr.bf16.vlgmr.msra.gmra.mxu1 %v1504_v55  ;;  %v3935_v21 = vld [vmem:[%s4614_s23 + $0x368] ss:$24 sps:$4 sm:$0xff]   ;;  %2155 = vmatprep.subr.bf16.mxu0 %v3988_v46 }
 0x394   : > { %2181 = vmatpush1.bf16.msra.mxu1 %v3905_v52  ;;  %v1470_v8 = vmul.f32 %v1462_v6, %v4946_v26  ;;  %v3931_v26 = vld [vmem:[%s4614_s23 + $0x39c] ss:$24 sps:$4 sm:$0xff]   ;;  %v3986_v4 = vld [vmem:[%s4614_s23 + $0x4b0] ss:$24 sps:$4 sm:$0xff]   ;;  %v3992_v48 = vld [vmem:[%s4614_s23 + $0x480] ss:$24 sps:$4 sm:$0xff]  }
 0x395   : > { %v1463_v38 = vadd.f32 %v1455_v12, %v1430_v51  ;;  %2182 = vmatprep.subr.bf16.mxu1 %v3913_v7 }
 0x396   : > { %v1506_v29 = vpack.c.bf16 %v1470_v8, %v1468_v20  ;;  %2156 = vmatpush2.bf16.msra.mxu0 %v3986_v4 }
 0x397   : > { %v1471_v16 = vmul.f32 %v1463_v38, %v4951_v33  ;;  %v3937_v33 = vld [vmem:[%s4614_s23 + $0x36c] ss:$24 sps:$4 sm:$0xff]   ;;  %2157 = vmatprep.subr.bf16.mxu0 %v3994_v61 }
 0x398   : > { %2183 = vmatpush1.bf16.msra.mxu1 %v3911_v49 }
 0x399   : > { %v1507_v27 = vpack.c.bf16 %v1471_v16, %v1469_v31  ;;  %2184 = vmatprep.subr.bf16.mxu1 %v3919_v15 }
 0x39a   : > { %2158 = vmatpush2.bf16.msra.mxu0 %v3992_v48 }
 0x39b   : > { %1710 = vmatprep.mubr.bf16.mxu1 %v1507_v27 }
 0x39c   : > { %1711 = vmatmul.mubr.bf16.gmra.mxu1 %v1506_v29 }
 0x39d   : > { %2185 = vmatpush1.bf16.msra.mxu1 %v3917_v24 }
 0x39e   : > { %2186 = vmatprep.subr.bf16.mxu1 %v3925_v30 }
 0x3a1   : > { %2187 = vmatpush1.bf16.msra.mxu1 %v3923_v28 }
 0x3a2   : > { %2188 = vmatprep.subr.bf16.mxu1 %v3931_v26 }
 0x3a5   : > { %2189 = vmatpush1.bf16.msra.mxu1 %v3929_v14 }
 0x3a6   : > { %2190 = vmatprep.subr.bf16.mxu1 %v3937_v33 }
 0x3a9   : > { %2191 = vmatpush1.bf16.msra.mxu1 %v3935_v21 }
 0x3aa   : > { %2192 = vmatprep.subr.bf16.mxu1 %v3943_v32 }
 0x3ad   : > { %2193 = vmatpush1.bf16.msra.mxu1 %v3941_v58 }
 0x3ae   : > { %2194 = vmatprep.subr.bf16.mxu1 %v3949_v34 }
 0x3b1   : > { %2195 = vmatpush1.bf16.msra.mxu1 %v3947_v25 }
 0x3b2   : > { %2196 = vmatprep.subr.bf16.mxu1 %v3955_v35 }
 0x3b5   : > { %2197 = vmatpush2.bf16.msra.mxu1 %v3953_v22 }
 0x3b6   : > { %2198 = vmatprep.subr.bf16.mxu1 %v3961_v36 }
 0x3b9   : > { %2199 = vmatpush2.bf16.msra.mxu1 %v3959_v42 }
 0x3ba   : > { %2200 = vmatprep.subr.bf16.mxu1 %v3967_v62 }
 0x3bd   : > { %2201 = vmatpush2.bf16.msra.mxu1 %v3965_v3 }
 0x3be   : > { %2202 = vmatprep.subr.bf16.mxu1 %v3973_v37 }
 0x3c1   : > { %2203 = vmatpush2.bf16.msra.mxu1 %v3971_v1 }
 0x3c2   : > { %2204 = vmatprep.subr.bf16.mxu1 %v3979_v18 }
 0x3c5   : > { %2205 = vmatpush2.bf16.msra.mxu1 %v3977_v41 }
 0x3c6   : > { %2206 = vmatprep.subr.bf16.mxu1 %v3985_v0 }
 0x3c9   : > { %2207 = vmatpush2.bf16.msra.mxu1 %v3983_v44 }
 0x3ca   : > { %2208 = vmatprep.subr.bf16.mxu1 %v3991_v10 }
 0x3cd   : > { %2209 = vmatpush2.bf16.msra.mxu1 %v3989_v47 }
 0x3ce   : > { %2210 = vmatprep.subr.bf16.mxu1 %v3997_v23 }
 0x3d1   : > { %2211 = vmatpush2.bf16.msra.mxu1 %v3995_v63 }
 0x453   : > { %v1702_v9 = vpop.f32.mrf.mxu1 }
 0x455   : > { %v1704_v50 = vpop.f32.mrf.mxu1 }
 0x457   : > { %v1706_v51 = vpop.f32.mrf.mxu1 }
 0x458   : > { %v1738_v13 = vpack.c.bf16 %v1706_v51, %v1702_v9 }
 0x459   : > { %v1708_v19 = vpop.f32.mrf.mxu1 }
 0x45a   : > { %v1739_v59 = vpack.c.bf16 %v1708_v19, %v1704_v50 }
 0x45c   : > { %v1712_v56 = vpop.f32.mrf.mxu1  ;;  %2159 = vmatprep.mubr.bf16.mxu0 %v1739_v59  ;;  %2212 = vmatprep.mubr.bf16.mxu1 %v1739_v59 }
 0x45d   : > { %2160 = vmatmul.mubr.bf16.vlgmr.msra.gmra.mxu0 %v1738_v13  ;;  %2213 = vmatmul.mubr.bf16.vlgmr.msra.gmra.mxu1 %v1738_v13 }
 0x45e   : > { %v1714_v53 = vpop.f32.mrf.mxu1 }
 0x460   : > { %v1716_v5 = vpop.f32.mrf.mxu1 }
 0x461   : > { %v1740_v2 = vpack.c.bf16 %v1716_v5, %v1712_v56 }
 0x462   : > { %v1718_v60 = vpop.f32.mrf.mxu1 }
 0x463   : > { %v1741_v57 = vpack.c.bf16 %v1718_v60, %v1714_v53 }
 0x465   : > { %2169 = vmatprep.mubr.bf16.mxu0 %v1741_v57  ;;  %2222 = vmatprep.mubr.bf16.mxu1 %v1741_v57 }
 0x466   : > { %2170 = vmatmul.mubr.bf16.gmra.mxu0 %v1740_v2  ;;  %2223 = vmatmul.mubr.bf16.gmra.mxu1 %v1740_v2 }
 0x467   : > { %2531 = vmatprep.mubr.f32.mxu0 %v4387_v54 }
 0x51d   : > { %v5013_v52 = vpop.f32.mrf.mxu0 }
 0x51e   : > { %v5016_v55 = vmul.f32 0.70710677, %v5013_v52 }
 0x51f   : > { %v5018_v6 = vpop.f32.mrf.mxu0 }
 0x520   : > { %v5021_v7 = vand.u32 2147483647, %v5016_v55  ;;  %v5024_v45 = vmul.f32 0.70710677, %v5018_v6  ;;  %vm2409_vm2 = vcmp.ge.f32.partialorder %v5016_v55, 0.0 }
 0x521   : > { %v5026_v12 = vpop.f32.mrf.mxu0 }
 0x522   : > { %v2257_v11 = vmul.f32 0.3275911, %v5021_v7  ;;  %v2250_v38 = vand.u32 2147483647, %v5024_v45  ;;  %v5031_v49 = vmul.f32 0.70710677, %v5026_v12 }
 0x523   : > { %v5033_v8 = vpop.f32.mrf.mxu0  ;;  %v2361_v53 = vsub.f32 0.0, %v5021_v7  ;;  %vm2410_vm12 = vcmp.ge.f32.partialorder %v5024_v45, 0.0 }
 0x524   : > { %v2265_v15 = vadd.f32 1.0, %v2257_v11  ;;  %v2258_v31 = vmul.f32 0.3275911, %v2250_v38  ;;  %v5036_v16 = vand.u32 2147483647, %v5031_v49  ;;  %v2362_v17 = vsub.f32 0.0, %v2250_v38 }
 0x525   : > { %v5039_v20 = vmul.f32 0.70710677, %v5033_v8  ;;  %vm2411_vm1 = vcmp.ge.f32.partialorder %v5031_v49, 0.0  ;;  %v2236_v55 = vmul.f32 0.5, %v5033_v8  ;;  %v2233_v8 = vmul.f32 0.5, %v5013_v52 }
 0x526   : > { %v5041_v27 = vpop.f32.mrf.mxu0  ;;  %4078 = vrcp.f32 %v2265_v15  ;;  %v2266_v24 = vadd.f32 1.0, %v2258_v31  ;;  %v2259_v29 = vmul.f32 0.3275911, %v5036_v16  ;;  %v2370_v63 = vmul.f32 %v2362_v17, %v2250_v38  ;;  %v4003_v52 = vld [vmem:[%s4614_s23 + $0x434] ss:$24 sps:$4 sm:$0xff]  }
 0x527   : > { %v2252_v30 = vand.u32 2147483647, %v5039_v20  ;;  %v5048_v26 = vmul.f32 0.70710677, %v5041_v27  ;;  %v2363_v15 = vsub.f32 0.0, %v5036_v16  ;;  %vm2412_vm15 = vcmp.ge.f32.partialorder %v5039_v20, 0.0 }
 0x528   : > { %v5045_v28 = vpop.f32.mrf.mxu0  ;;  %4080 = vrcp.f32 %v2266_v24  ;;  %v2267_v14 = vadd.f32 1.0, %v2259_v29  ;;  %v2379_v57 = vmul.f32 1.442695, %v2370_v63 }
 0x529   : > { %v2260_v33 = vmul.f32 0.3275911, %v2252_v30  ;;  %v2253_v32 = vand.u32 2147483647, %v5048_v26  ;;  %v5054_v25 = vmul.f32 0.70710677, %v5045_v28 }
 0x52a   : > { %v5050_v21 = vpop.f32.mrf.mxu0  ;;  %4082 = vrcp.f32 %v2267_v14  ;;  %v2364_v46 = vsub.f32 0.0, %v2252_v30  ;;  %vm2413_vm14 = vcmp.ge.f32.partialorder %v5048_v26, 0.0  ;;  %v2238_v49 = vmul.f32 0.5, %v5045_v28 }
 0x52b   : > { %v2268_v58 = vadd.f32 1.0, %v2260_v33  ;;  %v2261_v34 = vmul.f32 0.3275911, %v2253_v32  ;;  %v5057_v35 = vmul.f32 0.70710677, %v5050_v21  ;;  %v2365_v47 = vsub.f32 0.0, %v2253_v32 }
 0x52c   : > { %v5059_v22 = vpop.f32.mrf.mxu0  ;;  %v2254_v42 = vand.u32 2147483647, %v5054_v25  ;;  %v2372_v50 = vmul.f32 %v2364_v46, %v2252_v30  ;;  %vm2414_vm13 = vcmp.ge.f32.partialorder %v5054_v25, 0.0  ;;  %v2239_v20 = vmul.f32 0.5, %v5050_v21 }
 0x52d   : > { %4084 = vrcp.f32 %v2268_v58  ;;  %v2269_v36 = vadd.f32 1.0, %v2261_v34  ;;  %v2255_v62 = vand.u32 2147483647, %v5057_v35  ;;  %v5064_v3 = vmul.f32 0.70710677, %v5059_v22 }
 0x52e   : > { %v2262_v37 = vmul.f32 0.3275911, %v2254_v42  ;;  %v2366_v51 = vsub.f32 0.0, %v2254_v42  ;;  %v2373_v56 = vmul.f32 %v2365_v47, %v2253_v32  ;;  %v2383_v24 = vmul.f32 1.442695, %v2372_v50 }
 0x52f   : > { %4086 = vrcp.f32 %v2269_v36  ;;  %v2263_v1 = vmul.f32 0.3275911, %v2255_v62  ;;  %v5067_v39 = vand.u32 2147483647, %v5064_v3  ;;  %v2367_v11 = vsub.f32 0.0, %v2255_v62 }
 0x530   : > { %v2270_v40 = vadd.f32 1.0, %v2262_v37  ;;  %v2374_v29 = vmul.f32 %v2366_v51, %v2254_v42  ;;  %v2385_v14 = vmul.f32 1.442695, %v2373_v56  ;;  %v2369_v32 = vmul.f32 %v2361_v53, %v5021_v7 }
 0x531   : > { %v2271_v41 = vadd.f32 1.0, %v2263_v1  ;;  %v2264_v0 = vmul.f32 0.3275911, %v5067_v39  ;;  %v2375_v1 = vmul.f32 %v2367_v11, %v2255_v62  ;;  %v2368_v46 = vsub.f32 0.0, %v5067_v39 }
 0x532   : > { %4088 = vrcp.f32 %v2270_v40  ;;  %v2387_v42 = vmul.f32 1.442695, %v2374_v29  ;;  %v2377_v50 = vmul.f32 1.442695, %v2369_v32  ;;  %vm2415_vm11 = vcmp.ge.f32.partialorder %v5057_v35, 0.0 }
 0x533   : > { %v5069_v18 = vpop.eup %4078  ;;  %4090 = vrcp.f32 %v2271_v41  ;;  %v2272_v10 = vadd.f32 1.0, %v2264_v0  ;;  %v2371_v41 = vmul.f32 %v2363_v15, %v5036_v16  ;;  %v2389_v63 = vmul.f32 1.442695, %v2375_v1 }
 0x534   : > { %v2289_v43 = vmul.f32 1.0614054, %v5069_v18  ;;  %vm2416_vm0 = vcmp.ge.f32.partialorder %v5064_v3, 0.0  ;;  %v2240_v25 = vmul.f32 0.5, %v5059_v22  ;;  %v2235_v28 = vmul.f32 0.5, %v5026_v12 }
 0x535   : > { %v5073_v44 = vpop.eup %4080  ;;  %4092 = vrcp.f32 %v2272_v10  ;;  %v2381_v51 = vmul.f32 1.442695, %v2371_v41 }
 0x536   : > { %v2290_v4 = vmul.f32 1.0614054, %v5073_v44  ;;  %v2297_v23 = vadd.f32 -1.4531521, %v2289_v43  ;;  %4094 = vpow2.f32 %v2379_v57 }
 0x537   : > { %v5076_v61 = vpop.eup %4082  ;;  %4096 = vpow2.f32 %v2383_v24 }
 0x538   : > { %v2298_v48 = vadd.f32 -1.4531521, %v2290_v4  ;;  %v2291_v9 = vmul.f32 1.0614054, %v5076_v61  ;;  %v2305_v13 = vmul.f32 %v5069_v18, %v2297_v23  ;;  %4098 = vpow2.f32 %v2385_v14 }
 0x539   : > { %4100 = vpow2.f32 %v2387_v42 }
 0x53a   : > { %v5079_v19 = vpop.eup %4084  ;;  %v2299_v59 = vadd.f32 -1.4531521, %v2291_v9  ;;  %v2306_v60 = vmul.f32 %v5073_v44, %v2298_v48  ;;  %v2313_v33 = vadd.f32 1.4214138, %v2305_v13  ;;  %4102 = vpow2.f32 %v2389_v63 }
 0x53b   : > { %v2292_v5 = vmul.f32 1.0614054, %v5079_v19  ;;  %4104 = vpow2.f32 %v2381_v51 }
 0x53c   : > { %v2307_v2 = vmul.f32 %v5076_v61, %v2299_v59  ;;  %v5086_v38 = vpop.eup %4086  ;;  %v2314_v36 = vadd.f32 1.4214138, %v2306_v60  ;;  %v2321_v10 = vmul.f32 %v5069_v18, %v2313_v33  ;;  %4106 = vpow2.f32 %v2377_v50 }
 0x53d   : > { %v2300_v31 = vadd.f32 -1.4531521, %v2292_v5  ;;  %v2293_v30 = vmul.f32 1.0614054, %v5086_v38  ;;  %v2376_v5 = vmul.f32 %v2368_v46, %v5067_v39 }
 0x53e   : > { %v2315_v58 = vadd.f32 1.4214138, %v2307_v2  ;;  %v2322_v47 = vmul.f32 %v5073_v44, %v2314_v36  ;;  %v2329_v60 = vadd.f32 -0.28449672, %v2321_v10 }
 0x53f   : > { %v2308_v34 = vmul.f32 %v5079_v19, %v2300_v31  ;;  %v2301_v37 = vadd.f32 -1.4531521, %v2293_v30  ;;  %v5092_v40 = vpop.eup %4088  ;;  %v2391_v32 = vmul.f32 1.442695, %v2376_v5 }
 0x540   : > { %v5095_v0 = vpop.eup %4090  ;;  %v2294_v7 = vmul.f32 1.0614054, %v5092_v40  ;;  %v2323_v62 = vmul.f32 %v5076_v61, %v2315_v58  ;;  %v2330_v15 = vadd.f32 -0.28449672, %v2322_v47  ;;  %v2337_v36 = vmul.f32 %v5069_v18, %v2329_v60 }
 0x541   : > { %v2316_v43 = vadd.f32 1.4214138, %v2308_v34  ;;  %v2309_v17 = vmul.f32 %v5086_v38, %v2301_v37  ;;  %v2295_v16 = vmul.f32 1.0614054, %v5095_v0  ;;  %4108 = vpow2.f32 %v2391_v32 }
 0x542   : > { %v2302_v48 = vadd.f32 -1.4531521, %v2294_v7  ;;  %v5105_v9 = vpop.eup %4092  ;;  %v2331_v57 = vadd.f32 -0.28449672, %v2323_v62  ;;  %v2338_v37 = vmul.f32 %v5073_v44, %v2330_v15 }
 0x543   : > { %v2324_v4 = vmul.f32 %v5079_v19, %v2316_v43  ;;  %v2317_v23 = vadd.f32 1.4214138, %v2309_v17  ;;  %v2303_v59 = vadd.f32 -1.4531521, %v2295_v16  ;;  %v2296_v11 = vmul.f32 1.0614054, %v5105_v9  ;;  %v4095_v1 = vpop.eup %4094 }
 0x544   : > { %v2310_v53 = vmul.f32 %v5092_v40, %v2302_v48  ;;  %v2339_v39 = vmul.f32 %v5076_v61, %v2331_v57  ;;  %v4097_v7 = vpop.eup %4096  ;;  %v2346_v47 = vadd.f32 0.2548296, %v2338_v37  ;;  %v2345_v48 = vadd.f32 0.2548296, %v2337_v36 }
 0x545   : > { %v2332_v56 = vadd.f32 -0.28449672, %v2324_v4  ;;  %v2325_v13 = vmul.f32 %v5086_v38, %v2317_v23  ;;  %v2311_v2 = vmul.f32 %v5095_v0, %v2303_v59  ;;  %v2304_v34 = vadd.f32 -1.4531521, %v2296_v11  ;;  %v4099_v10 = vpop.eup %4098 }
 0x546   : > { %v2318_v24 = vadd.f32 1.4214138, %v2310_v53  ;;  %v2347_v62 = vadd.f32 0.2548296, %v2339_v39  ;;  %v4101_v51 = vpop.eup %4100  ;;  %v2354_v60 = vmul.f32 %v5073_v44, %v2346_v47  ;;  %v2353_v15 = vmul.f32 %v5069_v18, %v2345_v48 }
 0x547   : > { %v2333_v31 = vadd.f32 -0.28449672, %v2325_v13  ;;  %v2319_v29 = vadd.f32 1.4214138, %v2311_v2  ;;  %v2340_v30 = vmul.f32 %v5079_v19, %v2332_v56  ;;  %v2312_v17 = vmul.f32 %v5105_v9, %v2304_v34  ;;  %v4103_v11 = vpop.eup %4102 }
 0x548   : > { %v2326_v33 = vmul.f32 %v5092_v40, %v2318_v24  ;;  %v2355_v53 = vmul.f32 %v5076_v61, %v2347_v62  ;;  %v4105_v24 = vpop.eup %4104  ;;  %v2394_v61 = vmul.f32 %v4095_v1, %v2354_v60  ;;  %v2237_v60 = vmul.f32 0.5, %v5041_v27 }
 0x549   : > { %v2341_v14 = vmul.f32 %v5086_v38, %v2333_v31  ;;  %v2327_v58 = vmul.f32 %v5095_v0, %v2319_v29  ;;  %v2348_v46 = vadd.f32 0.2548296, %v2340_v30  ;;  %v2320_v23 = vadd.f32 1.4214138, %v2312_v17 }
 0x54a   : > { %v2334_v43 = vadd.f32 -0.28449672, %v2326_v33  ;;  %v4107_v33 = vpop.eup %4106  ;;  %v2234_v27 = vmul.f32 0.5, %v5018_v6  ;;  %v3513_v6 = vld [vmem:[%s4860_s28 + $0x20] sm:$0xff] }
 0x54b   : > { %v2349_v41 = vadd.f32 0.2548296, %v2341_v14  ;;  %v2335_v42 = vadd.f32 -0.28449672, %v2327_v58  ;;  %v2356_v59 = vmul.f32 %v5079_v19, %v2348_v46  ;;  %v2328_v13 = vmul.f32 %v5105_v9, %v2320_v23 }
 0x54c   : > { %v2342_v4 = vmul.f32 %v5092_v40, %v2334_v43  ;;  %v2395_v14 = vmul.f32 %v4105_v24, %v2355_v53  ;;  %v2393_v44 = vmul.f32 %v4107_v33, %v2353_v15  ;;  %v3998_v24 = vld [vmem:[%s4614_s23 + $0x460] ss:$24 sps:$4 sm:$0xff]  }
 0x54d   : > { %v2343_v16 = vmul.f32 %v5095_v0, %v2335_v42  ;;  %v2357_v63 = vmul.f32 %v5086_v38, %v2349_v41  ;;  %v2336_v2 = vadd.f32 -0.28449672, %v2328_v13  ;;  %v2396_v29 = vmul.f32 %v4097_v7, %v2356_v59  ;;  %v4004_v33 = vld [vmem:[%s4614_s23 + $0x400] ss:$24 sps:$4 sm:$0xff]  }
 0x54e   : > { %v2350_v50 = vadd.f32 0.2548296, %v2342_v4  ;;  %v4109_v36 = vpop.eup %4108  ;;  %v2403_v18 = vsub.f32 1.0, %v2395_v14  ;;  %v2402_v41 = vsub.f32 1.0, %v2394_v61  ;;  %v2401_v17 = vsub.f32 1.0, %v2393_v44  ;;  %v3515_v14 = vld [vmem:[%s4860_s28 + $0x30] sm:$0xff] }
 0x54f   : > { %v2351_v56 = vadd.f32 0.2548296, %v2343_v16  ;;  %v2397_v38 = vmul.f32 %v4099_v10, %v2357_v63  ;;  %v2344_v30 = vmul.f32 %v5105_v9, %v2336_v2  ;;  %v4009_v61 = vld [vmem:[%s4614_s23 + $0x3d4] ss:$24 sps:$4 sm:$0xff]   ;;  %v4010_v44 = vld [vmem:[%s4614_s23 + $0x3a0] ss:$24 sps:$4 sm:$0xff]  }
 0x550   : > { %v2358_v5 = vmul.f32 %v5092_v40, %v2350_v50  ;;  %v2419_v10 = vsub.f32 0.0, %v2403_v18  ;;  %v2418_v4 = vsub.f32 0.0, %v2402_v41  ;;  %v2417_v47 = vsub.f32 0.0, %v2401_v17 }
 0x551   : > { %v2359_v57 = vmul.f32 %v5095_v0, %v2351_v56  ;;  %v2352_v39 = vadd.f32 0.2548296, %v2344_v30  ;;  %v2405_v58 = vsub.f32 1.0, %v2397_v38  ;;  %v2404_v0 = vsub.f32 1.0, %v2396_v29  ;;  %v4000_v38 = vld [vmem:[%s4614_s23 + $0x464] ss:$24 sps:$4 sm:$0xff]  }
 0x552   : > { %v2398_v31 = vmul.f32 %v4101_v51, %v2358_v5  ;;  %v2427_v50 = vsel %vm2411_vm1, %v2403_v18, %v2419_v10  ;;  %v2426_v26 = vsel %vm2410_vm12, %v2402_v41, %v2418_v4  ;;  %v2425_v13 = vsel %vm2409_vm2, %v2401_v17, %v2417_v47  ;;  %v3514_v29 = vld [vmem:[%s4860_s28 + $0x28] sm:$0xff]  ;;  %v4019_v18 = vld [vmem:[%s4614_s23 + $0x310] ss:$24 sps:$4 sm:$0xff]  }
 0x553   : > { %v2399_v19 = vmul.f32 %v4103_v11, %v2359_v57  ;;  %v2360_v34 = vmul.f32 %v5105_v9, %v2352_v39  ;;  %v2421_v7 = vsub.f32 0.0, %v2405_v58  ;;  %v2420_v46 = vsub.f32 0.0, %v2404_v0  ;;  %v4006_v30 = vld [vmem:[%s4614_s23 + $0x404] ss:$24 sps:$4 sm:$0xff]   ;;  %v4022_v41 = vld [vmem:[%s4614_s23 + $0x5e0] ss:$24 sps:$4 sm:$0xff]  }
 0x554   : > { %v2406_v32 = vsub.f32 1.0, %v2398_v31  ;;  %v2435_v5 = vadd.f32 1.0, %v2427_v50  ;;  %v2434_v22 = vadd.f32 1.0, %v2426_v26  ;;  %v2433_v21 = vadd.f32 1.0, %v2425_v13  ;;  %v4012_v39 = vld [vmem:[%s4614_s23 + $0x3a4] ss:$24 sps:$4 sm:$0xff]  }
 0x555   : > { %v2407_v40 = vsub.f32 1.0, %v2399_v19  ;;  %v2400_v42 = vmul.f32 %v4109_v36, %v2360_v34  ;;  %v2429_v23 = vsel %vm2413_vm14, %v2405_v58, %v2421_v7  ;;  %v2428_v35 = vsel %vm2412_vm15, %v2404_v0, %v2420_v46  ;;  %v4001_v19 = vld [vmem:[%s4614_s23 + $0x430] ss:$24 sps:$4 sm:$0xff]   ;;  %v4015_v58 = vld [vmem:[%s4614_s23 + $0x374] ss:$24 sps:$4 sm:$0xff]  }
 0x556   : > { %v2422_v43 = vsub.f32 0.0, %v2406_v32  ;;  %v2437_v56 = vadd.f32 1.0, %v2429_v23  ;;  %v2436_v3 = vadd.f32 1.0, %v2428_v35  ;;  %v5163_v15 = vmul.f32 %v2435_v5, %v2235_v28  ;;  %v4013_v0 = vld [vmem:[%s4614_s23 + $0x370] ss:$24 sps:$4 sm:$0xff]  }
 0x557   : > { %v2423_v37 = vsub.f32 0.0, %v2407_v40  ;;  %v2408_v1 = vsub.f32 1.0, %v2400_v42  ;;  %v5166_v12 = vmul.f32 %v2434_v22, %v2234_v27  ;;  %v5170_v31 = vmul.f32 %v2433_v21, %v2233_v8  ;;  %v4016_v34 = vld [vmem:[%s4614_s23 + $0x340] ss:$24 sps:$4 sm:$0xff]   ;;  %v4021_v36 = vld [vmem:[%s4614_s23 + $0x314] ss:$24 sps:$4 sm:$0xff]  }
 0x558   : > { %v2430_v9 = vsel %vm2414_vm13, %v2406_v32, %v2422_v43  ;;  %v5155_v2 = vmul.f32 %v2437_v56, %v2237_v60  ;;  %v5159_v11 = vmul.f32 %v2436_v3, %v2236_v55  ;;  %v3516_v32 = vld [vmem:[%s4860_s28 + $0x38] sm:$0xff]  ;;  %v4028_v7 = vld [vmem:[%s4614_s23 + $0x580] ss:$24 sps:$4 sm:$0xff]  }
 0x559   : > { %v2431_v62 = vsel %vm2415_vm11, %v2407_v40, %v2423_v37  ;;  %v2424_v16 = vsub.f32 0.0, %v2408_v1  ;;  %v2438_v51 = vadd.f32 1.0, %v2430_v9  ;;  %v4007_v40 = vld [vmem:[%s4614_s23 + $0x3d0] ss:$24 sps:$4 sm:$0xff]   ;;  %v4024_v37 = vld [vmem:[%s4614_s23 + $0x5e4] ss:$24 sps:$4 sm:$0xff]  }
 0x55a   : > { %v2439_v48 = vadd.f32 1.0, %v2431_v62  ;;  %v4027_v43 = vld [vmem:[%s4614_s23 + $0x5b4] ss:$24 sps:$4 sm:$0xff]   ;;  %v4025_v42 = vld [vmem:[%s4614_s23 + $0x5b0] ss:$24 sps:$4 sm:$0xff]  }
 0x55b   : > { %v2432_v63 = vsel %vm2416_vm0, %v2408_v1, %v2424_v16  ;;  %v5151_v45 = vmul.f32 %v2438_v51, %v2238_v49  ;;  %v4030_v17 = vld [vmem:[%s4614_s23 + $0x584] ss:$24 sps:$4 sm:$0xff]   ;;  %v4033_v46 = vld [vmem:[%s4614_s23 + $0x554] ss:$24 sps:$4 sm:$0xff]   ;;  %v4031_v1 = vld [vmem:[%s4614_s23 + $0x550] ss:$24 sps:$4 sm:$0xff]   ;;  %v2581_v49 = vstv %s2556_s30 }
 0x55c   : > { %v2440_v59 = vadd.f32 1.0, %v2432_v63  ;;  %v5148_v57 = vmul.f32 %v2439_v48, %v2239_v20  ;;  %v4036_v10 = vld [vmem:[%s4614_s23 + $0x524] ss:$24 sps:$4 sm:$0xff]   ;;  %v4034_v62 = vld [vmem:[%s4614_s23 + $0x520] ss:$24 sps:$4 sm:$0xff]   ;;  %v2214_v48 = vpop.f32.mrf.mxu1 }
 0x55d   : > { %v4039_v4 = vld [vmem:[%s4614_s23 + $0x4f4] ss:$24 sps:$4 sm:$0xff]   ;;  %v4037_v9 = vld [vmem:[%s4614_s23 + $0x4f0] ss:$24 sps:$4 sm:$0xff]   ;;  %v4042_v16 = vld [vmem:[%s4614_s23 + $0x4c4] ss:$24 sps:$4 sm:$0xff]  }
 0x55e   : > { %v5145_v53 = vmul.f32 %v2440_v59, %v2240_v25  ;;  %v4040_v47 = vld [vmem:[%s4614_s23 + $0x4c0] ss:$24 sps:$4 sm:$0xff]   ;;  %v4045_v23 = vld [vmem:[%s4614_s23 + $0x494] ss:$24 sps:$4 sm:$0xff]   ;;  %v4043_v35 = vld [vmem:[%s4614_s23 + $0x490] ss:$24 sps:$4 sm:$0xff]   ;;  %v2216_v63 = vpop.f32.mrf.mxu1 }
 0x560   : > { %2491 = vmatprep.subr.mxu0 %v5145_v53  ;;  %v2218_v26 = vpop.f32.mrf.mxu1 }
 0x561   : > { %2492 = vmatpush1.msra.mxu0 %v5148_v57 }
 0x562   : > { %2493 = vmatprep.subr.mxu0 %v5151_v45  ;;  %v2220_v21 = vpop.f32.mrf.mxu1 }
 0x563   : > { %2494 = vmatpush1.msra.mxu0 %v5155_v2 }
 0x564   : > { %2495 = vmatprep.subr.mxu0 %v5159_v11 }
 0x565   : > { %2496 = vmatpush1.msra.mxu0 %v5163_v15 }
 0x566   : > { %2497 = vmatprep.subr.mxu0 %v5166_v12 }
 0x567   : > { %2498 = vmatpush1.msra.mxu0 %v5170_v31 }
 0x568   : > { %3517 = vmatmul.mubr.msk.f32.vlgmr.msra.gmra.mxu0 %vm1320_vm10, %v3513_v6  ;;  %2802 = vmatprep.subr.bf16.mxu0 %v4000_v38 }
 0x569   : > { %2537 = vmatprep.mubr.f32.mxu0 %v4387_v54  ;;  %2803 = vmatpush1.bf16.msra.mxu0 %v3998_v24 }
 0x56a   : > { %2804 = vmatprep.subr.bf16.mxu0 %v4003_v52 }
 0x56c   : > { %3518 = vmatmul.mubr.msk.f32.gmra.mxu0 %vm1320_vm10, %v3514_v29 }
 0x56d   : > { %2543 = vmatprep.mubr.f32.mxu0 %v4387_v54  ;;  %2805 = vmatpush1.bf16.msra.mxu0 %v4001_v19 }
 0x56e   : > { %2806 = vmatprep.subr.bf16.mxu0 %v4006_v30  ;;  %v2224_v30 = vpop.f32.mrf.mxu1 }
 0x570   : > { %3519 = vmatmul.mubr.msk.f32.gmra.mxu0 %vm1320_vm10, %v3515_v14 }
 0x571   : > { %2549 = vmatprep.mubr.f32.mxu0 %v4387_v54  ;;  %2807 = vmatpush1.bf16.msra.mxu0 %v4004_v33  ;;  %v4018_v54 = vld [vmem:[%s4614_s23 + $0x344] ss:$24 sps:$4 sm:$0xff]  }
 0x572   : > { %2808 = vmatprep.subr.bf16.mxu0 %v4009_v61 }
 0x574   : > { %3520 = vmatmul.mubr.msk.f32.gmra.mxu0 %vm1320_vm10, %v3516_v32 }
 0x575   : > { %2809 = vmatpush1.bf16.msra.mxu0 %v4007_v40 }
 0x576   : > { %2810 = vmatprep.subr.bf16.mxu0 %v4012_v39 }
 0x579   : > { %2811 = vmatpush1.bf16.msra.mxu0 %v4010_v44 }
 0x57a   : > { %2812 = vmatprep.subr.bf16.mxu0 %v4015_v58 }
 0x57d   : > { %2813 = vmatpush1.bf16.msra.mxu0 %v4013_v0 }
 0x57e   : > { %2814 = vmatprep.subr.bf16.mxu0 %v4018_v54 }
 0x581   : > { %2815 = vmatpush1.bf16.msra.mxu0 %v4016_v34 }
 0x582   : > { %2816 = vmatprep.subr.bf16.mxu0 %v4021_v36 }
 0x585   : > { %2817 = vmatpush1.bf16.msra.mxu0 %v4019_v18 }
 0x586   : > { %2818 = vmatprep.subr.bf16.mxu0 %v4024_v37 }
 0x589   : > { %2819 = vmatpush2.bf16.msra.mxu0 %v4022_v41 }
 0x58a   : > { %2820 = vmatprep.subr.bf16.mxu0 %v4027_v43 }
 0x58d   : > { %2821 = vmatpush2.bf16.msra.mxu0 %v4025_v42 }
 0x58e   : > { %2822 = vmatprep.subr.bf16.mxu0 %v4030_v17 }
 0x591   : > { %2823 = vmatpush2.bf16.msra.mxu0 %v4028_v7 }
 0x592   : > { %2824 = vmatprep.subr.bf16.mxu0 %v4033_v46 }
 0x595   : > { %2825 = vmatpush2.bf16.msra.mxu0 %v4031_v1 }
 0x596   : > { %2826 = vmatprep.subr.bf16.mxu0 %v4036_v10 }
 0x599   : > { %2827 = vmatpush2.bf16.msra.mxu0 %v4034_v62 }
 0x59a   : > { %2828 = vmatprep.subr.bf16.mxu0 %v4039_v4 }
 0x59d   : > { %2829 = vmatpush2.bf16.msra.mxu0 %v4037_v9 }
 0x59e   : > { %2830 = vmatprep.subr.bf16.mxu0 %v4042_v16 }
 0x5a1   : > { %2831 = vmatpush2.bf16.msra.mxu0 %v4040_v47 }
 0x5a2   : > { %2832 = vmatprep.subr.bf16.mxu0 %v4045_v23 }
 0x5a5   : > { %2833 = vmatpush2.bf16.msra.mxu0 %v4043_v35 }
 0x628   : > { %v2533_v50 = vpop.f32.mrf.mxu0 }
 0x629   : > { %v2557_v51 = vsub.f32 %v5170_v31, %v2533_v50  ;;  %v2565_v25 = vmul.f32 %v2533_v50, %v5170_v31 }
 0x62a   : > { %v2535_v59 = vpop.f32.mrf.mxu0 }
 0x62b   : > { %v2558_v56 = vsub.f32 %v5166_v12, %v2535_v59  ;;  %v2566_v20 = vmul.f32 %v2535_v59, %v5166_v12  ;;  %v2573_v13 = vsub.f32 %v2565_v25, %v2557_v51 }
 0x62c   : > { %v2539_v3 = vpop.f32.mrf.mxu0 }
 0x62d   : > { %v2574_v5 = vsub.f32 %v2566_v20, %v2558_v56  ;;  %v2559_v60 = vsub.f32 %v5163_v15, %v2539_v3  ;;  %v2567_v22 = vmul.f32 %v2539_v3, %v5163_v15  ;;  %v2582_v8 = vmul.f32 %v2581_v49, %v2573_v13 }
 0x62e   : > { %v2541_v55 = vpop.f32.mrf.mxu0 }
 0x62f   : > { %v2575_v28 = vsub.f32 %v2567_v22, %v2559_v60  ;;  %v2560_v27 = vsub.f32 %v5159_v11, %v2541_v55  ;;  %v2583_v38 = vmul.f32 %v2581_v49, %v2574_v5  ;;  %v2568_v31 = vmul.f32 %v2541_v55, %v5159_v11 }
 0x630   : > { %v2545_v6 = vpop.f32.mrf.mxu0  ;;  %v2590_v61 = vadd.f32 %v2582_v8, %v2557_v51 }
 0x631   : > { %v2584_v24 = vmul.f32 %v2581_v49, %v2575_v28  ;;  %v2561_v12 = vsub.f32 %v5155_v2, %v2545_v6  ;;  %v2576_v52 = vsub.f32 %v2568_v31, %v2560_v27  ;;  %v2569_v29 = vmul.f32 %v2545_v6, %v5155_v2  ;;  %v2226_v2 = vpop.f32.mrf.mxu1 }
 0x632   : > { %v2547_v19 = vpop.f32.mrf.mxu0  ;;  %v2591_v32 = vadd.f32 %v2583_v38, %v2558_v56  ;;  %v2598_v17 = vmul.f32 %v2590_v61, %v2214_v48 }
 0x633   : > { %v2592_v14 = vadd.f32 %v2584_v24, %v2559_v60  ;;  %v2562_v15 = vsub.f32 %v5151_v45, %v2547_v19  ;;  %v2570_v33 = vmul.f32 %v2547_v19, %v5151_v45  ;;  %v2585_v40 = vmul.f32 %v2581_v49, %v2576_v52  ;;  %v2228_v62 = vpop.f32.mrf.mxu1 }
 0x634   : > { %v2551_v39 = vpop.f32.mrf.mxu0  ;;  %v2577_v44 = vsub.f32 %v2569_v29, %v2561_v12  ;;  %v2599_v41 = vmul.f32 %v2591_v32, %v2216_v63 }
 0x635   : > { %v2578_v11 = vsub.f32 %v2570_v33, %v2562_v15  ;;  %v2563_v58 = vsub.f32 %v5148_v57, %v2551_v39  ;;  %v2571_v0 = vmul.f32 %v2551_v39, %v5148_v57  ;;  %v2593_v54 = vadd.f32 %v2585_v40, %v2560_v27  ;;  %v2230_v35 = vpop.f32.mrf.mxu1 }
 0x636   : > { %v2553_v34 = vpop.f32.mrf.mxu0  ;;  %v2600_v36 = vmul.f32 %v2592_v14, %v2218_v26  ;;  %v2586_v7 = vmul.f32 %v2581_v49, %v2577_v44 }
 0x637   : > { %v2579_v18 = vsub.f32 %v2571_v0, %v2563_v58  ;;  %v2564_v37 = vsub.f32 %v5145_v53, %v2553_v34  ;;  %v2601_v43 = vmul.f32 %v2593_v54, %v2220_v21  ;;  %v2587_v45 = vmul.f32 %v2581_v49, %v2578_v11 }
 0x638   : > { %v2572_v42 = vmul.f32 %v2553_v34, %v5145_v53  ;;  %v2638_v4 = vpack.c.bf16 %v2600_v36, %v2598_v17  ;;  %v2594_v47 = vadd.f32 %v2586_v7, %v2561_v12 }
 0x639   : > { %v2588_v46 = vmul.f32 %v2581_v49, %v2579_v18  ;;  %v2639_v10 = vpack.c.bf16 %v2601_v43, %v2599_v41  ;;  %v2595_v9 = vadd.f32 %v2587_v45, %v2562_v15 }
 0x63a   : > { %v2580_v1 = vsub.f32 %v2572_v42, %v2564_v37  ;;  %v2602_v25 = vmul.f32 %v2594_v47, %v2224_v30 }
 0x63b   : > { %v2596_v57 = vadd.f32 %v2588_v46, %v2563_v58  ;;  %2834 = vmatprep.mubr.bf16.mxu0 %v2639_v10  ;;  %v2603_v50 = vmul.f32 %v2595_v9, %v2226_v2 }
 0x63c   : > { %v2589_v16 = vmul.f32 %v2581_v49, %v2580_v1  ;;  %2835 = vmatmul.mubr.bf16.vlgmr.msra.gmra.mxu0 %v2638_v4 }
 0x63d   : > { %v2604_v63 = vmul.f32 %v2596_v57, %v2228_v62 }
 0x63e   : > { %v2597_v23 = vadd.f32 %v2589_v16, %v2564_v37 }
 0x63f   : > { %v2640_v48 = vpack.c.bf16 %v2604_v63, %v2602_v25 }
 0x640   : > { %v2605_v51 = vmul.f32 %v2597_v23, %v2230_v35 }
 0x642   : > { %v2641_v53 = vpack.c.bf16 %v2605_v51, %v2603_v50 }
 0x644   : > { %2844 = vmatprep.mubr.bf16.mxu0 %v2641_v53 }
 0x645   : > { %2845 = vmatmul.mubr.bf16.gmra.mxu0 %v2640_v48 }
 0x6fc   : > { %v2836_v59 = vpop.f32.mrf.mxu0 }
 0x6fd   : > { %2855 = vst [vmem:[#allocation2 + $0x30] sm:$0xff] %v2836_v59 }
 0x6fe   : > { %v2838_v26 = vpop.f32.mrf.mxu0 }
 0x6ff   : > { %2856 = vst [vmem:[#allocation2] sm:$0xff] %v2838_v26 }
 0x700   : > { %v2840_v56 = vpop.f32.mrf.mxu0 }
 0x701   : > { %2857 = vst [vmem:[#allocation2 + $0x18] sm:$0xff] %v2840_v56 }
 0x702   : > { %v2842_v20 = vpop.f32.mrf.mxu0 }
 0x703   : > { %2858 = vst [vmem:[#allocation2 + $0x10] sm:$0xff] %v2842_v20 }
 0x705   : > { %v2846_v13 = vpop.f32.mrf.mxu0 }
 0x706   : > { %2859 = vst [vmem:[#allocation2 + $0x8] sm:$0xff] %v2846_v13 }
 0x707   : > { %v2848_v3 = vpop.f32.mrf.mxu0 }
 0x708   : > { %2860 = vst [vmem:[#allocation2 + $0x20] sm:$0xff] %v2848_v3  ;;  %2866 = sbr.rel (%p3585_p13) target bundleno = 2343 (0x927), region = 96 }
 0x709   : > { %v2850_v49 = vpop.f32.mrf.mxu0 }
 0x70a   : > { %2861 = vst [vmem:[#allocation2 + $0x28] sm:$0xff] %v2850_v49 }
 0x70b   : > { %v2852_v5 = vpop.f32.mrf.mxu0 }
 0x70c   : > { %2862 = vst [vmem:[#allocation2 + $0x38] sm:$0xff] %v2852_v5 }
 0x70d   : > { %v2867_v60 = vld [vmem:[#allocation2 + $0x30] sm:$0xff]  ;;  %v2868_v22 = vld [vmem:[#allocation2] sm:$0xff]  ;;  %v2871_v55 = vld [vmem:[#allocation2 + $0x8] sm:$0xff]  ;;  %vm3056_vm3 = vcmask 1041409   ;;  %vm3131_vm4 = vcmask 74752  }
 0x70e   : > { %v2875_v21 = vadd.f32 %v2868_v22, %v2867_v60  ;;  %v2869_v27 = vld [vmem:[#allocation2 + $0x18] sm:$0xff]  ;;  %v2870_v8 = vld [vmem:[#allocation2 + $0x10] sm:$0xff]  ;;  %v3042_v57 = vld [vmem:[%s5405_s8 + $0xe8] sm:$0xff] }
 0x70f   : > { %v2872_v28 = vld [vmem:[#allocation2 + $0x20] sm:$0xff]  ;;  %v2878_v24 = vadd.f32 %v2870_v8, %v2869_v27  ;;  %v3044_v1 = vld [vmem:[%s5405_s8 + $0xf8] sm:$0xff]  ;;  %v3043_v62 = vld [vmem:[%s5405_s8 + $0xf0] sm:$0xff] }
 0x710   : > { %v2881_v38 = vadd.f32 %v2872_v28, %v2871_v55  ;;  %2876 = vadd.xlane.f32.xlu0 %v2875_v21  ;;  %3593 = vmatprep.subr.mxu0 %v3044_v1  ;;  %v3028_v10 = vld [vmem:[%s5405_s8 + $0x78] sm:$0xff]  ;;  %v3027_v4 = vld [vmem:[%s5405_s8 + $0x70] sm:$0xff]  ;;  %v3026_v9 = vld [vmem:[%s5405_s8 + $0x68] sm:$0xff] }
 0x711   : > { %v2873_v31 = vld [vmem:[#allocation2 + $0x28] sm:$0xff]  ;;  %3594 = vmatpush3.msra.mxu0 %v3028_v10  ;;  %v3041_v16 = vld [vmem:[%s5405_s8 + $0xe0] sm:$0xff]  ;;  %v3040_v23 = vld [vmem:[%s5405_s8 + $0xd8] sm:$0xff] }
 0x712   : > { %2882 = vadd.xlane.f32.xlu1 %v2881_v38  ;;  %3595 = vmatprep.subr.mxu0 %v3043_v62  ;;  %v3025_v47 = vld [vmem:[%s5405_s8 + $0x60] sm:$0xff]  ;;  %v3024_v35 = vld [vmem:[%s5405_s8 + $0x58] sm:$0xff]  ;;  %v3039_v63 = vld [vmem:[%s5405_s8 + $0xd0] sm:$0xff] }
 0x713   : > { %v2874_v6 = vld [vmem:[#allocation2 + $0x38] sm:$0xff]  ;;  %3596 = vmatpush3.msra.mxu0 %v3027_v4  ;;  %v3023_v50 = vld [vmem:[%s5405_s8 + $0x50] sm:$0xff]  ;;  %v3038_v51 = vld [vmem:[%s5405_s8 + $0xc8] sm:$0xff] }
 0x714   : > { %v2884_v12 = vadd.f32 %v2874_v6, %v2873_v31  ;;  %2879 = vadd.xlane.f32.xlu0 %v2878_v24  ;;  %3597 = vmatprep.subr.mxu0 %v3042_v57  ;;  %v3022_v25 = vld [vmem:[%s5405_s8 + $0x48] sm:$0xff]  ;;  %v3037_v53 = vld [vmem:[%s5405_s8 + $0xc0] sm:$0xff]  ;;  %v3036_v59 = vld [vmem:[%s5405_s8 + $0xb8] sm:$0xff] }
 0x715   : > { %3598 = vmatpush3.msra.mxu0 %v3026_v9  ;;  %v3021_v48 = vld [vmem:[%s5405_s8 + $0x40] sm:$0xff]  ;;  %v3020_v26 = vld [vmem:[%s5405_s8 + $0x38] sm:$0xff]  ;;  %v3035_v56 = vld [vmem:[%s5405_s8 + $0xb0] sm:$0xff] }
 0x716   : > { %2885 = vadd.xlane.f32.xlu1 %v2884_v12  ;;  %3599 = vmatprep.subr.mxu0 %v3041_v16  ;;  %v3019_v20 = vld [vmem:[%s5405_s8 + $0x30] sm:$0xff]  ;;  %v3034_v13 = vld [vmem:[%s5405_s8 + $0xa8] sm:$0xff]  ;;  %v3033_v49 = vld [vmem:[%s5405_s8 + $0xa0] sm:$0xff] }
 0x717   : > { %3600 = vmatpush3.msra.mxu0 %v3025_v47  ;;  %v3018_v3 = vld [vmem:[%s5405_s8 + $0x28] sm:$0xff]  ;;  %v3017_v5 = vld [vmem:[%s5405_s8 + $0x20] sm:$0xff]  ;;  %v3015_v21 = vld [vmem:[%s5405_s8 + $0x10] sm:$0xff] }
 0x718   : > { %3601 = vmatprep.subr.mxu0 %v3040_v23  ;;  %v3013_v38 = vld [vmem:[%s5405_s8] sm:$0xff] }
 0x719   : > { %3602 = vmatpush3.msra.mxu0 %v3024_v35 }
 0x71a   : > { %3603 = vmatprep.subr.mxu0 %v3039_v63 }
 0x71b   : > { %3604 = vmatpush3.msra.mxu0 %v3023_v50 }
 0x71c   : > { %3605 = vmatprep.subr.mxu0 %v3038_v51 }
 0x71d   : > { %3606 = vmatpush3.msra.mxu0 %v3022_v25 }
 0x71e   : > { %3607 = vmatprep.subr.mxu0 %v3037_v53 }
 0x71f   : > { %3608 = vmatpush3.msra.mxu0 %v3021_v48 }
 0x720   : > { %3609 = vmatprep.subr.mxu0 %v3036_v59 }
 0x721   : > { %3610 = vmatpush3.msra.mxu0 %v3020_v26 }
 0x722   : > { %3611 = vmatprep.subr.mxu0 %v3035_v56 }
 0x723   : > { %3612 = vmatpush3.msra.mxu0 %v3019_v20 }
 0x724   : > { %3613 = vmatprep.subr.mxu0 %v3034_v13 }
 0x725   : > { %3614 = vmatpush3.msra.mxu0 %v3018_v3 }
 0x726   : > { %3615 = vmatprep.subr.mxu0 %v3033_v49 }
 0x727   : > { %3616 = vmatpush3.msra.mxu0 %v3017_v5 }
 0x799   : > { %v2877_v52 = vpop.xlane.xlu0 %2876 }
 0x79a   : > { %v2888_v29 = vmul.f32 0.00390625, %v2877_v52 }
 0x79b   : > { %v2883_v19 = vpop.xlane.xlu1 %2882 }
 0x79c   : > { %v2890_v30 = vmul.f32 0.00390625, %v2883_v19  ;;  %v5236_v14 = vsub.f32 %v2867_v60, %v2888_v29  ;;  %v5238_v15 = vsub.f32 %v2868_v22, %v2888_v29  ;;  %v3032_v60 = vld [vmem:[%s5405_s8 + $0x98] sm:$0xff] }
 0x79d   : > { %v2880_v32 = vpop.xlane.xlu0 %2879  ;;  %v3016_v22 = vld [vmem:[%s5405_s8 + $0x18] sm:$0xff]  ;;  %3617 = vmatprep.subr.mxu0 %v3032_v60 }
 0x79e   : > { %v5240_v33 = vsub.f32 %v2871_v55, %v2890_v30  ;;  %v5242_v61 = vsub.f32 %v2872_v28, %v2890_v30  ;;  %v2889_v40 = vmul.f32 0.00390625, %v2880_v32  ;;  %v2900_v44 = vmul.f32 %v5236_v14, %v5236_v14  ;;  %v3031_v55 = vld [vmem:[%s5405_s8 + $0x90] sm:$0xff]  ;;  %3618 = vmatpush3.msra.mxu0 %v3016_v22  ;;  %v3030_v28 = vld [vmem:[%s5405_s8 + $0x88] sm:$0xff] }
 0x79f   : > { %v2886_v39 = vpop.xlane.xlu1 %2885  ;;  %v2901_v11 = vmul.f32 %v5238_v15, %v5238_v15  ;;  %3619 = vmatprep.subr.mxu0 %v3031_v55  ;;  %v2942_v30 = vlaneseq }
 0x7a0   : > { %v2891_v58 = vmul.f32 0.00390625, %v2886_v39  ;;  %v2904_v0 = vmul.f32 %v5240_v33, %v5240_v33  ;;  %v2905_v54 = vmul.f32 %v5242_v61, %v5242_v61  ;;  %v5252_v34 = vsub.f32 %v2869_v27, %v2889_v40  ;;  %v3014_v27 = vld [vmem:[%s5405_s8 + $0x8] sm:$0xff]  ;;  %3620 = vmatpush3.msra.mxu0 %v3015_v21 }
 0x7a1   : > { %v5254_v2 = vsub.f32 %v2870_v8, %v2889_v40  ;;  %v2908_v36 = vadd.f32 %v2901_v11, %v2900_v44  ;;  %v3029_v8 = vld [vmem:[%s5405_s8 + $0x80] sm:$0xff]  ;;  %3621 = vmatprep.subr.mxu0 %v3030_v28  ;;  %v2943_v11 = vshrl.u32 %v2942_v30, 7 }
 0x7a2   : > { %v5256_v18 = vsub.f32 %v2873_v31, %v2891_v58  ;;  %v5258_v37 = vsub.f32 %v2874_v6, %v2891_v58  ;;  %v2914_v41 = vadd.f32 %v2905_v54, %v2904_v0  ;;  %v2902_v43 = vmul.f32 %v5252_v34, %v5252_v34  ;;  %3622 = vmatpush3.msra.mxu0 %v3014_v27 }
 0x7a3   : > { %2909 = vadd.xlane.f32.xlu0 %v2908_v36  ;;  %v2903_v45 = vmul.f32 %v5254_v2, %v5254_v2  ;;  %3623 = vmatprep.subr.mxu0 %v3029_v8  ;;  %v2948_v0 = vsub.s32 1, %v2943_v11  ;;  %v2944_v54 = vsub.s32 0, %v2943_v11  ;;  %v2940_v36 = vld [vmem:[#allocation11] sm:$0x3] }
 0x7a4   : > { %v2906_v42 = vmul.f32 %v5256_v18, %v5256_v18  ;;  %v2907_v17 = vmul.f32 %v5258_v37, %v5258_v37  ;;  %3624 = vmatpush3.msra.mxu0 %v3013_v38 }
 0x7a5   : > { %v2911_v7 = vadd.f32 %v2903_v45, %v2902_v43  ;;  %v2949_v43 = vrot.slane %v2940_v36, %v2948_v0  ;;  %v2945_v45 = vrot.slane %v2940_v36, %v2944_v54 }
 0x7a6   : > { %v2917_v46 = vadd.f32 %v2907_v17, %v2906_v42 }
 0x7a7   : > { %2915 = vadd.xlane.f32.xlu0 %v2914_v41  ;;  %2912 = vadd.xlane.f32.xlu1 %v2911_v7  ;;  %v2960_v7 = vld [vmem:[#allocation12] sm:$0x3] }
 0x7a8   : > { %v2969_v10 = vrot.slane %v2960_v7, %v2948_v0  ;;  %v2965_v4 = vrot.slane %v2960_v7, %v2944_v54 }
 0x7ab   : > { %2918 = vadd.xlane.f32.xlu1 %v2917_v46 }
 0x82c   : > { %v2910_v31 = vpop.xlane.xlu0 %2909 }
 0x82d   : > { %v2920_v6 = vmul.f32 0.00390625, %v2910_v31 }
 0x82f   : > { %v2924_v24 = vadd.f32 1e-05, %v2920_v6 }
 0x830   : > { %v2913_v12 = vpop.xlane.xlu1 %2912  ;;  %v2916_v52 = vpop.xlane.xlu0 %2915 }
 0x831   : > { %4110 = vrsqrt.f32 %v2924_v24  ;;  %v2921_v29 = vmul.f32 0.00390625, %v2913_v12  ;;  %v2922_v19 = vmul.f32 0.00390625, %v2916_v52 }
 0x833   : > { %v2925_v32 = vadd.f32 1e-05, %v2921_v29  ;;  %v2926_v40 = vadd.f32 1e-05, %v2922_v19 }
 0x834   : > { %v2919_v39 = vpop.xlane.xlu1 %2918 }
 0x835   : > { %4112 = vrsqrt.f32 %v2925_v32  ;;  %v2923_v44 = vmul.f32 0.00390625, %v2919_v39 }
 0x836   : > { %4114 = vrsqrt.f32 %v2926_v40 }
 0x837   : > { %v2927_v58 = vadd.f32 1e-05, %v2923_v44 }
 0x839   : > { %4116 = vrsqrt.f32 %v2927_v58 }
 0x83e   : > { %v4111_v41 = vpop.eup %4110 }
 0x83f   : > { %v2932_v42 = vmul.f32 %v4111_v41, %v5236_v14  ;;  %v2933_v17 = vmul.f32 %v4111_v41, %v5238_v15 }
 0x841   : > { %v2953_v1 = vmul.f32 %v2949_v43, %v2933_v17  ;;  %v2952_v62 = vmul.f32 %v2945_v45, %v2932_v42  ;;  %v3586_v17 = vld [vmem:[#allocation14] ss:$0 sm:$0xff] }
 0x842   : > { %v4113_v46 = vpop.eup %4112 }
 0x843   : > { %v4115_v57 = vpop.eup %4114  ;;  %v2934_v9 = vmul.f32 %v4113_v46, %v5252_v34  ;;  %v2935_v16 = vmul.f32 %v4113_v46, %v5254_v2  ;;  %v2973_v15 = vadd.f32 %v2969_v10, %v2953_v1  ;;  %v2972_v25 = vadd.f32 %v2965_v4, %v2952_v62 }
 0x844   : > { %v2936_v47 = vmul.f32 %v4115_v57, %v5240_v33  ;;  %v2937_v23 = vmul.f32 %v4115_v57, %v5242_v61 }
 0x845   : > { %v2955_v35 = vmul.f32 %v2949_v43, %v2935_v16  ;;  %v2954_v63 = vmul.f32 %v2945_v45, %v2934_v9 }
 0x846   : > { %v4117_v14 = vpop.eup %4116  ;;  %v2957_v50 = vmul.f32 %v2949_v43, %v2937_v23  ;;  %v2956_v51 = vmul.f32 %v2945_v45, %v2936_v47 }
 0x847   : > { %v2938_v53 = vmul.f32 %v4117_v14, %v5256_v18  ;;  %v2939_v48 = vmul.f32 %v4117_v14, %v5258_v37  ;;  %v2975_v59 = vadd.f32 %v2969_v10, %v2955_v35  ;;  %v2974_v26 = vadd.f32 %v2965_v4, %v2954_v63 }
 0x848   : > { %v2977_v33 = vadd.f32 %v2969_v10, %v2957_v50  ;;  %v2976_v13 = vadd.f32 %v2965_v4, %v2956_v51 }
 0x849   : > { %v2959_v34 = vmul.f32 %v2949_v43, %v2939_v48  ;;  %v2987_v56 = vadd.f32 %v2975_v59, %v2973_v15  ;;  %v2958_v2 = vmul.f32 %v2945_v45, %v2938_v53  ;;  %v2980_v20 = vadd.f32 %v2974_v26, %v2972_v25 }
 0x84b   : > { %v2979_v61 = vadd.f32 %v2969_v10, %v2959_v34  ;;  %v2988_v3 = vrot.slane %v2987_v56, 4  ;;  %v2978_v49 = vadd.f32 %v2965_v4, %v2958_v2  ;;  %v2981_v5 = vrot.slane %v2980_v20, 4 }
 0x84d   : > { %v2989_v60 = vadd.f32 %v2988_v3, %v2987_v56  ;;  %v3001_v22 = vadd.f32 %v2979_v61, %v2977_v33  ;;  %v2982_v55 = vadd.f32 %v2981_v5, %v2980_v20  ;;  %v2994_v21 = vadd.f32 %v2978_v49, %v2976_v13 }
 0x84f   : > { %v2990_v28 = vrot.slane %v2989_v60, 2  ;;  %v3002_v18 = vrot.slane %v3001_v22, 4  ;;  %v2983_v27 = vrot.slane %v2982_v55, 2  ;;  %v2995_v37 = vrot.slane %v2994_v21, 4 }
 0x851   : > { %v2991_v8 = vadd.f32 %v2990_v28, %v2989_v60  ;;  %v3003_v38 = vadd.f32 %v3002_v18, %v3001_v22  ;;  %v2984_v31 = vadd.f32 %v2983_v27, %v2982_v55  ;;  %v2996_v6 = vadd.f32 %v2995_v37, %v2994_v21 }
 0x853   : > { %v2992_v24 = vrot.slane %v2991_v8, 1  ;;  %v3004_v12 = vrot.slane %v3003_v38, 2  ;;  %v2985_v52 = vrot.slane %v2984_v31, 1  ;;  %v2997_v29 = vrot.slane %v2996_v6, 2 }
 0x855   : > { %v3005_v19 = vadd.f32 %v3004_v12, %v3003_v38  ;;  %v2998_v30 = vadd.f32 %v2997_v29, %v2996_v6  ;;  %v2993_v32 = vadd.f32 %v2992_v24, %v2991_v8  ;;  %v2986_v39 = vadd.f32 %v2985_v52, %v2984_v31 }
 0x857   : > { %v3006_v40 = vrot.slane %v3005_v19, 1  ;;  %v2999_v44 = vrot.slane %v2998_v30, 1  ;;  %v3010_v0 = vmul.f32 0.0625, %v2993_v32  ;;  %v3009_v36 = vmul.f32 0.0625, %v2986_v39 }
 0x859   : > { %v3007_v11 = vadd.f32 %v3006_v40, %v3005_v19  ;;  %v3000_v58 = vadd.f32 %v2999_v44, %v2998_v30 }
 0x85b   : > { %v3012_v54 = vmul.f32 0.0625, %v3007_v11  ;;  %v3011_v41 = vmul.f32 0.0625, %v3000_v58 }
 0x85d   : > { %v3058_v43 = vsel %vm3056_vm3, %v3012_v54, %v3010_v0  ;;  %v3057_v45 = vsel %vm3056_vm3, %v3011_v41, %v3009_v36 }
 0x85e   : > { %3125 = vmatprep.mubr.f32.mxu0 %v3058_v43 }
 0x85f   : > { %3126 = vmatmul.mubr.f32.vlgmr.msra.gmra.mxu0 %v3057_v45 }
 0x91f   : > { %v3625_v42 = vpop.f32.mrf.mxu0 }
 0x921   : > { %v3626_v7 = vpop.f32.mrf.mxu0 }
 0x922   : > { %v3627_v46 = vadd.f32 %v3626_v7, %v3625_v42 }
 0x924   : > { %v3128_v1 = vadd.f32 %v3627_v46, %v3586_v17 }
 0x926   : > { %3132 = vst.msk [vmem:[#allocation15] sm:$0x3] %vm3131_vm4, %v3128_v1 }
 0x927 PF: > { %p3711_p12 = scmp.eq.s32.totalorder %s4465_s19, 2  ;;  %s4388_s18 = smov [#allocation15]  }
 0x928   : > { %s3140_s12 = sshll.u32 %s4388_s18, 4  ;;  %s3141_s12 = int_to_ptr.vmem [resolvable:$true] %s3140_s12 }
 0x929   : > { %s4291_s21 = scalar_lea.vmem %s3141_s12, 32  ;;  %p4298_p11 = scmp.lt.s32.totalorder %s3141_s12, %s3141_s12 }
 0x92a   : > { %p4292_p0 = scmp.ne.s32.totalorder %s3141_s12, %s4291_s21  ;;  %p4299_p7 = scmp.lt.s32.totalorder %s4291_s21, %s4291_s21 }
 0x92c   : > { %p4293_p3 = pnand %p4292_p0, %p3711_p12  ;;  %p4300_p6 = por %p4299_p7, %p4298_p11 }
 0x92e   : > { %p4294_p4 = pneg %p4293_p3 }
 0x930   : > { %p4301_p1 = pnand %p4300_p6, %p4294_p4 }
 0x932   : > { %4304 = shalt.err (!%p4301_p1)
}
 0x933   : > { %3672 = dma.vmem_to_hbm [thread:$0]  (%p3711_p12), %s3141_s12, 32, %s5407_s10, [#allocation5]  }
 0x934   : > { %4356 = dma.done.wait (%p3711_p12), [#allocation5], 32  }
 0x935   : > { %4358 = vsyncadd (%p3711_p12), [#allocation5], 4294967264 }
 0x936 PF: > { %p22_p2 = scmp.ge.s32.totalorder %s4543_s29, 5   ;;  %s5430_s13 = smov %s4365_s14 }
 0x937   : > { %s5431_s14 = smov %s4369_s15  ;;  %s5432_s15 = smov %s4555_s25 }
 0x938   : > { %s5433_s16 = smov %s4543_s29  ;;  %24 = sbr.rel (!%p22_p2) target bundleno = 6 (0x6), region = 132 }
 0x93d   :  { %3153 = vsyncpa [#allocation4], 1 }
 0x93e   :  { %3155 = vsyncpa [#allocation4 + $0x1], 1 }
 0x93f   :  { %3156 = vsyncpa [#allocation9], 1 }
 0x940   :  { %3157 = vsyncpa [#allocation13], 1 }
 0x941   :  { %3158 = vsyncpa [#allocation5], 1 }
 0x942   :  { %3160 = vsyncpa [#allocation5 + $0x1], 1 }
 0x943   :  { %3161 = vsyncpa [#allocation6], 1 }
 0x944   :  { %3163 = vsyncpa [#allocation6 + $0x1], 1 }

</bundles_post_ra>
